<compile_context>
chip_gen: v7x
topology: tpu7x:2x2x1
jax: 0.10.0
libtpu: 0.0.40
codegen_flags: <defaults>
</compile_context>

<pallas_src>
import jax
import jax.numpy as jnp
import numpy as np
from jax.experimental import pallas as pl
from jax.experimental.pallas import tpu as pltpu

VOCAB_SIZE = 16
EMBED_DIM = 32
BATCH = 8
SEQ = 8
OUT_LANES = 128  # packed output slab width (>= 2E + 2V = 96)


# ----------------------------------------------------------------------------
# Fused kernel: embeddings + both LSTM recurrences + both output heads.
# ----------------------------------------------------------------------------
def fused_kernel(q_idx_ref, r_idx_ref, emb_ref, wih_ref, whh_ref, b_ref,
                 out_w_ref, out_b_ref, fc1_w_ref, fc1_b_ref,
                 fc2_w_ref, fc2_b_ref, out_ref):
    TB = q_idx_ref.shape[0]          # T * B rows, time-major
    V3, E2 = emb_ref.shape           # (3V, 2E) block-diag embedding table
    V = V3 // 3
    B = out_ref.shape[0]
    T = TB // B

    # ---- fused one-hot embedding lookup (q and qa side by side) ----
    q_col = q_idx_ref[...]                               # (TB, 1) int32
    qa_col = q_col + r_idx_ref[...] * V                  # (TB, 1) int32
    lanes = jax.lax.broadcasted_iota(jnp.int32, (TB, V3), 1)
    # lanes [0, V) select q_embed rows, lanes [V, 3V) select qa_embed rows.
    onehot = ((lanes == q_col) | ((lanes - V) == qa_col)).astype(jnp.float32)
    x_cat = jnp.dot(onehot, emb_ref[...],
                    preferred_element_type=jnp.float32)  # (TB, 2E) = [x_q|x_qa]

    # ---- hoisted input projection for ALL timesteps and both LSTMs ----
    gates_x = jnp.dot(x_cat, wih_ref[...],
                      preferred_element_type=jnp.float32) + b_ref[...]  # (TB, 8E)

    # ---- fused recurrence: one (B,2E)@(2E,8E) matmul per step ----
    whh = whh_ref[...]
    h = jnp.zeros((B, E2), jnp.float32)   # [h_q | h_qa]
    c = jnp.zeros((B, E2), jnp.float32)   # [c_q | c_qa]
    for t in range(T):                    # fully unrolled in-kernel time loop
        g = gates_x[t * B:(t + 1) * B, :] + jnp.dot(
            h, whh, preferred_element_type=jnp.float32)          # (B, 8E)
        i_g = jax.nn.sigmoid(g[:, 0 * E2:1 * E2])
        f_g = jax.nn.sigmoid(g[:, 1 * E2:2 * E2])
        g_g = jnp.tanh(g[:, 2 * E2:3 * E2])
        o_g = jax.nn.sigmoid(g[:, 3 * E2:4 * E2])
        c = f_g * c + i_g * g_g
        h = o_g * jnp.tanh(c)

    state = h                                                    # (B, 2E)

    # ---- output heads ----
    logits = jnp.dot(state, out_w_ref[...],
                     preferred_element_type=jnp.float32) + out_b_ref[...]
    hid = jnp.maximum(
        jnp.dot(state, fc1_w_ref[...],
                preferred_element_type=jnp.float32) + fc1_b_ref[...], 0.0)
    qvals = jnp.dot(hid, fc2_w_ref[...],
                    preferred_element_type=jnp.float32) + fc2_b_ref[...]

    # ---- lane-dense packed output: [state | logits | qvals | pad] ----
    pieces = [state, logits, qvals]
    pad_w = out_ref.shape[1] - (E2 + 2 * V)
    if pad_w:
        pieces.append(jnp.zeros((B, pad_w), jnp.float32))
    out_ref[...] = jnp.concatenate(pieces, axis=1)


def _full_spec(a):
    nd = a.ndim
    return pl.BlockSpec(a.shape, lambda i, nd=nd: (0,) * nd)


def rcl4er_forward(params, q_seq, r_seq):
    B, T = q_seq.shape
    V, E = VOCAB_SIZE, EMBED_DIM
    E2 = 2 * E

    # Time-major flat index columns (tiny int glue; all float work is fused).
    q_idx = jnp.transpose(q_seq).reshape(T * B, 1).astype(jnp.int32)
    r_idx = jnp.transpose(r_seq).reshape(T * B, 1).astype(jnp.int32)

    args = (q_idx, r_idx,
            params["emb_pack"], params["wih_pack"], params["whh_pack"],
            params["b_pack"],
            params["out_w"], params["out_b"],
            params["fc1_w"], params["fc1_b"],
            params["fc2_w"], params["fc2_b"])

    packed = pl.pallas_call(
        fused_kernel,
        out_shape=jax.ShapeDtypeStruct((B, OUT_LANES), jnp.float32),
        grid=(1,),
        in_specs=[_full_spec(a) for a in args],
        out_specs=pl.BlockSpec((B, OUT_LANES), lambda i: (0, 0)),
        compiler_params=pltpu.CompilerParams(
            dimension_semantics=("arbitrary",)),
    )(*args)

    state = packed[:, :E2]
    logits = packed[:, E2:E2 + V]
    q_values = packed[:, E2 + V:E2 + 2 * V]
    return logits, q_values, state


# ----------------------------------------------------------------------------
# Parameter init (standard layout) + packing into the fused kernel layout.
# ----------------------------------------------------------------------------
def pack_fused_weights(p, vocab_size, embed_dim):
    V, E = vocab_size, embed_dim
    E2 = 2 * E

    # Block-diagonal embedding: rows [0,V) -> q_embed into cols [0,E),
    #                           rows [V,3V) -> qa_embed into cols [E,2E).
    emb = jnp.zeros((3 * V, E2), jnp.float32)
    emb = emb.at[0:V, 0:E].set(p["q_embed"])
    emb = emb.at[V:3 * V, E:E2].set(p["qa_embed"])

    # Gate-interleaved block-diagonal LSTM weights:
    # fused gate layout = [i_q i_qa | f_q f_qa | g_q g_qa | o_q o_qa], each E wide.
    def interleave_w(wq, wqa):
        w = jnp.zeros((E2, 8 * E), jnp.float32)
        for k in range(4):
            w = w.at[0:E, (2 * k) * E:(2 * k + 1) * E].set(wq[:, k * E:(k + 1) * E])
            w = w.at[E:E2, (2 * k + 1) * E:(2 * k + 2) * E].set(wqa[:, k * E:(k + 1) * E])
        return w

    def interleave_b(bq, bqa):
        b = jnp.zeros((1, 8 * E), jnp.float32)
        for k in range(4):
            b = b.at[:, (2 * k) * E:(2 * k + 1) * E].set(bq[:, k * E:(k + 1) * E])
            b = b.at[:, (2 * k + 1) * E:(2 * k + 2) * E].set(bqa[:, k * E:(k + 1) * E])
        return b

    return {
        "emb_pack": emb,
        "wih_pack": interleave_w(p["lstm_q_wih"], p["lstm_qa_wih"]),
        "whh_pack": interleave_w(p["lstm_q_whh"], p["lstm_qa_whh"]),
        "b_pack": interleave_b(p["lstm_q_b"], p["lstm_qa_b"]),
    }


def init_params(key, vocab_size, embed_dim):
    E, V = embed_dim, vocab_size
    ks = jax.random.split(key, 14)
    p = {}
    p["q_embed"] = jax.random.normal(ks[0], (V, E), jnp.float32) * 0.1
    p["qa_embed"] = jax.random.normal(ks[1], (2 * V, E), jnp.float32) * 0.1
    # LSTM weights stored (in, 4E); biases pre-summed (b_ih + b_hh) -> (1, 4E)
    for name, k0 in (("lstm_q", 2), ("lstm_qa", 5)):
        p[name + "_wih"] = jax.random.normal(ks[k0], (E, 4 * E), jnp.float32) * 0.1
        p[name + "_whh"] = jax.random.normal(ks[k0 + 1], (E, 4 * E), jnp.float32) * 0.1
        p[name + "_b"] = jax.random.normal(ks[k0 + 2], (1, 4 * E), jnp.float32) * 0.1
    # out: Linear(2E, V);  q_net: Linear(2E, E) -> relu -> Linear(E, V)
    p["out_w"] = jax.random.normal(ks[8], (2 * E, V), jnp.float32) * 0.1
    p["out_b"] = jax.random.normal(ks[9], (1, V), jnp.float32) * 0.1
    p["fc1_w"] = jax.random.normal(ks[10], (2 * E, E), jnp.float32) * 0.1
    p["fc1_b"] = jax.random.normal(ks[11], (1, E), jnp.float32) * 0.1
    p["fc2_w"] = jax.random.normal(ks[12], (E, V), jnp.float32) * 0.1
    p["fc2_b"] = jax.random.normal(ks[13], (1, V), jnp.float32) * 0.1
    # Fused-kernel weight layouts (derived once from the standard layout).
    p.update(pack_fused_weights(p, V, E))
    return p


# ----------------------------------------------------------------------------
# Pure-JAX reference (standard, un-packed weights) for a correctness check.
# ----------------------------------------------------------------------------
def lstm_ref(x_tbe, wih, whh, b):
    T, B, E = x_tbe.shape
    h = jnp.zeros((B, E), jnp.float32)
    c = jnp.zeros((B, E), jnp.float32)
    for t in range(T):
        g = x_tbe[t] @ wih + h @ whh + b
        i = jax.nn.sigmoid(g[:, 0 * E:1 * E])
        f = jax.nn.sigmoid(g[:, 1 * E:2 * E])
        gg = jnp.tanh(g[:, 2 * E:3 * E])
        o = jax.nn.sigmoid(g[:, 3 * E:4 * E])
        c = f * c + i * gg
        h = o * jnp.tanh(c)
    return h


def forward_ref(params, q_seq, r_seq):
    qa_seq = q_seq + r_seq.astype(jnp.int32) * VOCAB_SIZE
    q_emb = jnp.take(params["q_embed"], q_seq, axis=0).transpose(1, 0, 2)
    qa_emb = jnp.take(params["qa_embed"], qa_seq, axis=0).transpose(1, 0, 2)
    h_q = lstm_ref(q_emb, params["lstm_q_wih"], params["lstm_q_whh"],
                   params["lstm_q_b"])
    h_qa = lstm_ref(qa_emb, params["lstm_qa_wih"], params["lstm_qa_whh"],
                    params["lstm_qa_b"])
    state = jnp.concatenate([h_q, h_qa], axis=1)
    logits = state @ params["out_w"] + params["out_b"]
    hid = jnp.maximum(state @ params["fc1_w"] + params["fc1_b"], 0.0)
    q_values = hid @ params["fc2_w"] + params["fc2_b"]
    return logits, q_values, state


if __name__ == "__main__":
    key = jax.random.PRNGKey(0)
    kp, kq, kr = jax.random.split(key, 3)

    params = init_params(kp, VOCAB_SIZE, EMBED_DIM)
    q_seq = jax.random.randint(kq, (BATCH, SEQ), 0, VOCAB_SIZE, dtype=jnp.int32)
    r_seq = jax.random.randint(kr, (BATCH, SEQ), 0, 2, dtype=jnp.int32)

    fwd = jax.jit(rcl4er_forward)
    logits, q_values, state = jax.block_until_ready(fwd(params, q_seq, r_seq))

    ref_logits, ref_qvals, ref_state = forward_ref(params, q_seq, r_seq)
    assert np.allclose(np.asarray(logits), np.asarray(ref_logits), atol=1e-4)
    assert np.allclose(np.asarray(q_values), np.asarray(ref_qvals), atol=1e-4)
    assert np.allclose(np.asarray(state), np.asarray(ref_state), atol=1e-4)

    print("KERNEL_OK")
</pallas_src>

<mosaic_0001>
module attributes {stable_mosaic.version = 11 : i64} {
  func.func @fused_kernel(%arg0: i32, %arg1: memref<64x1xi32, #tpu.memory_space<vmem>>, %arg2: memref<64x1xi32, #tpu.memory_space<vmem>>, %arg3: memref<48x64xf32, #tpu.memory_space<vmem>>, %arg4: memref<64x256xf32, #tpu.memory_space<vmem>>, %arg5: memref<64x256xf32, #tpu.memory_space<vmem>>, %arg6: memref<1x256xf32, #tpu.memory_space<vmem>>, %arg7: memref<64x16xf32, #tpu.memory_space<vmem>>, %arg8: memref<1x16xf32, #tpu.memory_space<vmem>>, %arg9: memref<64x32xf32, #tpu.memory_space<vmem>>, %arg10: memref<1x32xf32, #tpu.memory_space<vmem>>, %arg11: memref<32x16xf32, #tpu.memory_space<vmem>>, %arg12: memref<1x16xf32, #tpu.memory_space<vmem>>, %arg13: memref<8x128xf32, #tpu.memory_space<vmem>>) attributes {dimension_semantics = [#tpu.dimension_semantics<arbitrary>], iteration_bounds = array<i64: 1>, scalar_prefetch = 0 : i64, scratch_operands = 0 : i64, tpu.core_type = #tpu.core_type<tc>, window_params = [{pipeline_mode = #tpu.pipeline_mode<synchronous>, transform_indices = @transform_0, window_bounds = array<i64: 64, 1>}, {pipeline_mode = #tpu.pipeline_mode<synchronous>, transform_indices = @transform_1, window_bounds = array<i64: 64, 1>}, {pipeline_mode = #tpu.pipeline_mode<synchronous>, transform_indices = @transform_2, window_bounds = array<i64: 48, 64>}, {pipeline_mode = #tpu.pipeline_mode<synchronous>, transform_indices = @transform_3, window_bounds = array<i64: 64, 256>}, {pipeline_mode = #tpu.pipeline_mode<synchronous>, transform_indices = @transform_4, window_bounds = array<i64: 64, 256>}, {pipeline_mode = #tpu.pipeline_mode<synchronous>, transform_indices = @transform_5, window_bounds = array<i64: 1, 256>}, {pipeline_mode = #tpu.pipeline_mode<synchronous>, transform_indices = @transform_6, window_bounds = array<i64: 64, 16>}, {pipeline_mode = #tpu.pipeline_mode<synchronous>, transform_indices = @transform_7, window_bounds = array<i64: 1, 16>}, {pipeline_mode = #tpu.pipeline_mode<synchronous>, transform_indices = @transform_8, window_bounds = array<i64: 64, 32>}, {pipeline_mode = #tpu.pipeline_mode<synchronous>, transform_indices = @transform_9, window_bounds = array<i64: 1, 32>}, {pipeline_mode = #tpu.pipeline_mode<synchronous>, transform_indices = @transform_10, window_bounds = array<i64: 32, 16>}, {pipeline_mode = #tpu.pipeline_mode<synchronous>, transform_indices = @transform_11, window_bounds = array<i64: 1, 16>}, {pipeline_mode = #tpu.pipeline_mode<synchronous>, transform_indices = @transform_12, window_bounds = array<i64: 8, 128>}]} {
    %c0 = arith.constant 0 : index
    %c0_0 = arith.constant 0 : index
    %0 = vector.load %arg1[%c0, %c0_0] : memref<64x1xi32, #tpu.memory_space<vmem>>, vector<64x1xi32>
    %c0_1 = arith.constant 0 : index
    %c0_2 = arith.constant 0 : index
    %1 = vector.load %arg2[%c0_1, %c0_2] : memref<64x1xi32, #tpu.memory_space<vmem>>, vector<64x1xi32>
    %c16_i32 = arith.constant 16 : i32
    %2 = vector.broadcast %c16_i32 : i32 to vector<64x1xi32>
    %3 = arith.muli %1, %2 : vector<64x1xi32>
    %4 = arith.addi %0, %3 : vector<64x1xi32>
    %5 = tpu.iota {dimensions = array<i32: 1>} : vector<64x48xi32>
    %6 = vector.broadcast %0 : vector<64x1xi32> to vector<64x48xi32>
    %7 = arith.cmpi eq, %5, %6 : vector<64x48xi32>
    %c16_i32_3 = arith.constant 16 : i32
    %8 = vector.broadcast %c16_i32_3 : i32 to vector<64x48xi32>
    %9 = arith.subi %5, %8 : vector<64x48xi32>
    %10 = vector.broadcast %4 : vector<64x1xi32> to vector<64x48xi32>
    %11 = arith.cmpi eq, %9, %10 : vector<64x48xi32>
    %12 = arith.ori %7, %11 : vector<64x48xi1>
    %13 = arith.extui %12 : vector<64x48xi1> to vector<64x48xi32>
    %14 = arith.sitofp %13 : vector<64x48xi32> to vector<64x48xf32>
    %c0_4 = arith.constant 0 : index
    %c0_5 = arith.constant 0 : index
    %15 = vector.load %arg3[%c0_4, %c0_5] : memref<48x64xf32, #tpu.memory_space<vmem>>, vector<48x64xf32>
    %cst = arith.constant dense<0.000000e+00> : vector<64x64xf32>
    %16 = tpu.matmul %14, %15, %cst {dimension_numbers = #tpu.dot_dimension_numbers<[1], [0], [0], [1], [0, 0, 1, 1], [], []>} : vector<64x48xf32>, vector<48x64xf32>, vector<64x64xf32> -> vector<64x64xf32>
    %c0_6 = arith.constant 0 : index
    %c0_7 = arith.constant 0 : index
    %17 = vector.load %arg4[%c0_6, %c0_7] : memref<64x256xf32, #tpu.memory_space<vmem>>, vector<64x256xf32>
    %cst_8 = arith.constant dense<0.000000e+00> : vector<64x256xf32>
    %18 = tpu.matmul %16, %17, %cst_8 {dimension_numbers = #tpu.dot_dimension_numbers<[1], [0], [0], [1], [0, 0, 1, 1], [], []>} : vector<64x64xf32>, vector<64x256xf32>, vector<64x256xf32> -> vector<64x256xf32>
    %c0_9 = arith.constant 0 : index
    %c0_10 = arith.constant 0 : index
    %19 = vector.load %arg6[%c0_9, %c0_10] : memref<1x256xf32, #tpu.memory_space<vmem>>, vector<1x256xf32>
    %20 = vector.broadcast %19 : vector<1x256xf32> to vector<64x256xf32>
    %21 = arith.addf %18, %20 : vector<64x256xf32>
    %c0_11 = arith.constant 0 : index
    %c0_12 = arith.constant 0 : index
    %22 = vector.load %arg5[%c0_11, %c0_12] : memref<64x256xf32, #tpu.memory_space<vmem>>, vector<64x256xf32>
    %cst_13 = arith.constant 0.000000e+00 : f32
    %23 = vector.broadcast %cst_13 : f32 to vector<8x64xf32>
    %cst_14 = arith.constant 0.000000e+00 : f32
    %24 = vector.broadcast %cst_14 : f32 to vector<8x64xf32>
    %25 = vector.extract_strided_slice %21 {offsets = [0, 0], sizes = [8, 256], strides = [1, 1]} : vector<64x256xf32> to vector<8x256xf32>
    %cst_15 = arith.constant dense<0.000000e+00> : vector<8x256xf32>
    %26 = tpu.matmul %23, %22, %cst_15 {dimension_numbers = #tpu.dot_dimension_numbers<[1], [0], [0], [1], [0, 0, 1, 1], [], []>} : vector<8x64xf32>, vector<64x256xf32>, vector<8x256xf32> -> vector<8x256xf32>
    %27 = arith.addf %25, %26 : vector<8x256xf32>
    %28 = vector.extract_strided_slice %27 {offsets = [0, 0], sizes = [8, 64], strides = [1, 1]} : vector<8x256xf32> to vector<8x64xf32>
    %29 = arith.negf %28 : vector<8x64xf32>
    %30 = math.exp %29 : vector<8x64xf32>
    %cst_16 = arith.constant 1.000000e+00 : f32
    %31 = vector.broadcast %cst_16 : f32 to vector<8x64xf32>
    %32 = arith.addf %31, %30 : vector<8x64xf32>
    %33 = arith.divf %31, %32 : vector<8x64xf32>
    %34 = vector.extract_strided_slice %27 {offsets = [0, 64], sizes = [8, 64], strides = [1, 1]} : vector<8x256xf32> to vector<8x64xf32>
    %35 = arith.negf %34 : vector<8x64xf32>
    %36 = math.exp %35 : vector<8x64xf32>
    %cst_17 = arith.constant 1.000000e+00 : f32
    %37 = vector.broadcast %cst_17 : f32 to vector<8x64xf32>
    %38 = arith.addf %37, %36 : vector<8x64xf32>
    %39 = arith.divf %37, %38 : vector<8x64xf32>
    %40 = vector.extract_strided_slice %27 {offsets = [0, 128], sizes = [8, 64], strides = [1, 1]} : vector<8x256xf32> to vector<8x64xf32>
    %41 = math.tanh %40 : vector<8x64xf32>
    %42 = vector.extract_strided_slice %27 {offsets = [0, 192], sizes = [8, 64], strides = [1, 1]} : vector<8x256xf32> to vector<8x64xf32>
    %43 = arith.negf %42 : vector<8x64xf32>
    %44 = math.exp %43 : vector<8x64xf32>
    %cst_18 = arith.constant 1.000000e+00 : f32
    %45 = vector.broadcast %cst_18 : f32 to vector<8x64xf32>
    %46 = arith.addf %45, %44 : vector<8x64xf32>
    %47 = arith.divf %45, %46 : vector<8x64xf32>
    %48 = arith.mulf %39, %24 : vector<8x64xf32>
    %49 = arith.mulf %33, %41 : vector<8x64xf32>
    %50 = arith.addf %48, %49 : vector<8x64xf32>
    %51 = math.tanh %50 : vector<8x64xf32>
    %52 = arith.mulf %47, %51 : vector<8x64xf32>
    %53 = vector.extract_strided_slice %21 {offsets = [8, 0], sizes = [8, 256], strides = [1, 1]} : vector<64x256xf32> to vector<8x256xf32>
    %cst_19 = arith.constant dense<0.000000e+00> : vector<8x256xf32>
    %54 = tpu.matmul %52, %22, %cst_19 {dimension_numbers = #tpu.dot_dimension_numbers<[1], [0], [0], [1], [0, 0, 1, 1], [], []>} : vector<8x64xf32>, vector<64x256xf32>, vector<8x256xf32> -> vector<8x256xf32>
    %55 = arith.addf %53, %54 : vector<8x256xf32>
    %56 = vector.extract_strided_slice %55 {offsets = [0, 0], sizes = [8, 64], strides = [1, 1]} : vector<8x256xf32> to vector<8x64xf32>
    %57 = arith.negf %56 : vector<8x64xf32>
    %58 = math.exp %57 : vector<8x64xf32>
    %cst_20 = arith.constant 1.000000e+00 : f32
    %59 = vector.broadcast %cst_20 : f32 to vector<8x64xf32>
    %60 = arith.addf %59, %58 : vector<8x64xf32>
    %61 = arith.divf %59, %60 : vector<8x64xf32>
    %62 = vector.extract_strided_slice %55 {offsets = [0, 64], sizes = [8, 64], strides = [1, 1]} : vector<8x256xf32> to vector<8x64xf32>
    %63 = arith.negf %62 : vector<8x64xf32>
    %64 = math.exp %63 : vector<8x64xf32>
    %cst_21 = arith.constant 1.000000e+00 : f32
    %65 = vector.broadcast %cst_21 : f32 to vector<8x64xf32>
    %66 = arith.addf %65, %64 : vector<8x64xf32>
    %67 = arith.divf %65, %66 : vector<8x64xf32>
    %68 = vector.extract_strided_slice %55 {offsets = [0, 128], sizes = [8, 64], strides = [1, 1]} : vector<8x256xf32> to vector<8x64xf32>
    %69 = math.tanh %68 : vector<8x64xf32>
    %70 = vector.extract_strided_slice %55 {offsets = [0, 192], sizes = [8, 64], strides = [1, 1]} : vector<8x256xf32> to vector<8x64xf32>
    %71 = arith.negf %70 : vector<8x64xf32>
    %72 = math.exp %71 : vector<8x64xf32>
    %cst_22 = arith.constant 1.000000e+00 : f32
    %73 = vector.broadcast %cst_22 : f32 to vector<8x64xf32>
    %74 = arith.addf %73, %72 : vector<8x64xf32>
    %75 = arith.divf %73, %74 : vector<8x64xf32>
    %76 = arith.mulf %67, %50 : vector<8x64xf32>
    %77 = arith.mulf %61, %69 : vector<8x64xf32>
    %78 = arith.addf %76, %77 : vector<8x64xf32>
    %79 = math.tanh %78 : vector<8x64xf32>
    %80 = arith.mulf %75, %79 : vector<8x64xf32>
    %81 = vector.extract_strided_slice %21 {offsets = [16, 0], sizes = [8, 256], strides = [1, 1]} : vector<64x256xf32> to vector<8x256xf32>
    %cst_23 = arith.constant dense<0.000000e+00> : vector<8x256xf32>
    %82 = tpu.matmul %80, %22, %cst_23 {dimension_numbers = #tpu.dot_dimension_numbers<[1], [0], [0], [1], [0, 0, 1, 1], [], []>} : vector<8x64xf32>, vector<64x256xf32>, vector<8x256xf32> -> vector<8x256xf32>
    %83 = arith.addf %81, %82 : vector<8x256xf32>
    %84 = vector.extract_strided_slice %83 {offsets = [0, 0], sizes = [8, 64], strides = [1, 1]} : vector<8x256xf32> to vector<8x64xf32>
    %85 = arith.negf %84 : vector<8x64xf32>
    %86 = math.exp %85 : vector<8x64xf32>
    %cst_24 = arith.constant 1.000000e+00 : f32
    %87 = vector.broadcast %cst_24 : f32 to vector<8x64xf32>
    %88 = arith.addf %87, %86 : vector<8x64xf32>
    %89 = arith.divf %87, %88 : vector<8x64xf32>
    %90 = vector.extract_strided_slice %83 {offsets = [0, 64], sizes = [8, 64], strides = [1, 1]} : vector<8x256xf32> to vector<8x64xf32>
    %91 = arith.negf %90 : vector<8x64xf32>
    %92 = math.exp %91 : vector<8x64xf32>
    %cst_25 = arith.constant 1.000000e+00 : f32
    %93 = vector.broadcast %cst_25 : f32 to vector<8x64xf32>
    %94 = arith.addf %93, %92 : vector<8x64xf32>
    %95 = arith.divf %93, %94 : vector<8x64xf32>
    %96 = vector.extract_strided_slice %83 {offsets = [0, 128], sizes = [8, 64], strides = [1, 1]} : vector<8x256xf32> to vector<8x64xf32>
    %97 = math.tanh %96 : vector<8x64xf32>
    %98 = vector.extract_strided_slice %83 {offsets = [0, 192], sizes = [8, 64], strides = [1, 1]} : vector<8x256xf32> to vector<8x64xf32>
    %99 = arith.negf %98 : vector<8x64xf32>
    %100 = math.exp %99 : vector<8x64xf32>
    %cst_26 = arith.constant 1.000000e+00 : f32
    %101 = vector.broadcast %cst_26 : f32 to vector<8x64xf32>
    %102 = arith.addf %101, %100 : vector<8x64xf32>
    %103 = arith.divf %101, %102 : vector<8x64xf32>
    %104 = arith.mulf %95, %78 : vector<8x64xf32>
    %105 = arith.mulf %89, %97 : vector<8x64xf32>
    %106 = arith.addf %104, %105 : vector<8x64xf32>
    %107 = math.tanh %106 : vector<8x64xf32>
    %108 = arith.mulf %103, %107 : vector<8x64xf32>
    %109 = vector.extract_strided_slice %21 {offsets = [24, 0], sizes = [8, 256], strides = [1, 1]} : vector<64x256xf32> to vector<8x256xf32>
    %cst_27 = arith.constant dense<0.000000e+00> : vector<8x256xf32>
    %110 = tpu.matmul %108, %22, %cst_27 {dimension_numbers = #tpu.dot_dimension_numbers<[1], [0], [0], [1], [0, 0, 1, 1], [], []>} : vector<8x64xf32>, vector<64x256xf32>, vector<8x256xf32> -> vector<8x256xf32>
    %111 = arith.addf %109, %110 : vector<8x256xf32>
    %112 = vector.extract_strided_slice %111 {offsets = [0, 0], sizes = [8, 64], strides = [1, 1]} : vector<8x256xf32> to vector<8x64xf32>
    %113 = arith.negf %112 : vector<8x64xf32>
    %114 = math.exp %113 : vector<8x64xf32>
    %cst_28 = arith.constant 1.000000e+00 : f32
    %115 = vector.broadcast %cst_28 : f32 to vector<8x64xf32>
    %116 = arith.addf %115, %114 : vector<8x64xf32>
    %117 = arith.divf %115, %116 : vector<8x64xf32>
    %118 = vector.extract_strided_slice %111 {offsets = [0, 64], sizes = [8, 64], strides = [1, 1]} : vector<8x256xf32> to vector<8x64xf32>
    %119 = arith.negf %118 : vector<8x64xf32>
    %120 = math.exp %119 : vector<8x64xf32>
    %cst_29 = arith.constant 1.000000e+00 : f32
    %121 = vector.broadcast %cst_29 : f32 to vector<8x64xf32>
    %122 = arith.addf %121, %120 : vector<8x64xf32>
    %123 = arith.divf %121, %122 : vector<8x64xf32>
    %124 = vector.extract_strided_slice %111 {offsets = [0, 128], sizes = [8, 64], strides = [1, 1]} : vector<8x256xf32> to vector<8x64xf32>
    %125 = math.tanh %124 : vector<8x64xf32>
    %126 = vector.extract_strided_slice %111 {offsets = [0, 192], sizes = [8, 64], strides = [1, 1]} : vector<8x256xf32> to vector<8x64xf32>
    %127 = arith.negf %126 : vector<8x64xf32>
    %128 = math.exp %127 : vector<8x64xf32>
    %cst_30 = arith.constant 1.000000e+00 : f32
    %129 = vector.broadcast %cst_30 : f32 to vector<8x64xf32>
    %130 = arith.addf %129, %128 : vector<8x64xf32>
    %131 = arith.divf %129, %130 : vector<8x64xf32>
    %132 = arith.mulf %123, %106 : vector<8x64xf32>
    %133 = arith.mulf %117, %125 : vector<8x64xf32>
    %134 = arith.addf %132, %133 : vector<8x64xf32>
    %135 = math.tanh %134 : vector<8x64xf32>
    %136 = arith.mulf %131, %135 : vector<8x64xf32>
    %137 = vector.extract_strided_slice %21 {offsets = [32, 0], sizes = [8, 256], strides = [1, 1]} : vector<64x256xf32> to vector<8x256xf32>
    %cst_31 = arith.constant dense<0.000000e+00> : vector<8x256xf32>
    %138 = tpu.matmul %136, %22, %cst_31 {dimension_numbers = #tpu.dot_dimension_numbers<[1], [0], [0], [1], [0, 0, 1, 1], [], []>} : vector<8x64xf32>, vector<64x256xf32>, vector<8x256xf32> -> vector<8x256xf32>
    %139 = arith.addf %137, %138 : vector<8x256xf32>
    %140 = vector.extract_strided_slice %139 {offsets = [0, 0], sizes = [8, 64], strides = [1, 1]} : vector<8x256xf32> to vector<8x64xf32>
    %141 = arith.negf %140 : vector<8x64xf32>
    %142 = math.exp %141 : vector<8x64xf32>
    %cst_32 = arith.constant 1.000000e+00 : f32
    %143 = vector.broadcast %cst_32 : f32 to vector<8x64xf32>
    %144 = arith.addf %143, %142 : vector<8x64xf32>
    %145 = arith.divf %143, %144 : vector<8x64xf32>
    %146 = vector.extract_strided_slice %139 {offsets = [0, 64], sizes = [8, 64], strides = [1, 1]} : vector<8x256xf32> to vector<8x64xf32>
    %147 = arith.negf %146 : vector<8x64xf32>
    %148 = math.exp %147 : vector<8x64xf32>
    %cst_33 = arith.constant 1.000000e+00 : f32
    %149 = vector.broadcast %cst_33 : f32 to vector<8x64xf32>
    %150 = arith.addf %149, %148 : vector<8x64xf32>
    %151 = arith.divf %149, %150 : vector<8x64xf32>
    %152 = vector.extract_strided_slice %139 {offsets = [0, 128], sizes = [8, 64], strides = [1, 1]} : vector<8x256xf32> to vector<8x64xf32>
    %153 = math.tanh %152 : vector<8x64xf32>
    %154 = vector.extract_strided_slice %139 {offsets = [0, 192], sizes = [8, 64], strides = [1, 1]} : vector<8x256xf32> to vector<8x64xf32>
    %155 = arith.negf %154 : vector<8x64xf32>
    %156 = math.exp %155 : vector<8x64xf32>
    %cst_34 = arith.constant 1.000000e+00 : f32
    %157 = vector.broadcast %cst_34 : f32 to vector<8x64xf32>
    %158 = arith.addf %157, %156 : vector<8x64xf32>
    %159 = arith.divf %157, %158 : vector<8x64xf32>
    %160 = arith.mulf %151, %134 : vector<8x64xf32>
    %161 = arith.mulf %145, %153 : vector<8x64xf32>
    %162 = arith.addf %160, %161 : vector<8x64xf32>
    %163 = math.tanh %162 : vector<8x64xf32>
    %164 = arith.mulf %159, %163 : vector<8x64xf32>
    %165 = vector.extract_strided_slice %21 {offsets = [40, 0], sizes = [8, 256], strides = [1, 1]} : vector<64x256xf32> to vector<8x256xf32>
    %cst_35 = arith.constant dense<0.000000e+00> : vector<8x256xf32>
    %166 = tpu.matmul %164, %22, %cst_35 {dimension_numbers = #tpu.dot_dimension_numbers<[1], [0], [0], [1], [0, 0, 1, 1], [], []>} : vector<8x64xf32>, vector<64x256xf32>, vector<8x256xf32> -> vector<8x256xf32>
    %167 = arith.addf %165, %166 : vector<8x256xf32>
    %168 = vector.extract_strided_slice %167 {offsets = [0, 0], sizes = [8, 64], strides = [1, 1]} : vector<8x256xf32> to vector<8x64xf32>
    %169 = arith.negf %168 : vector<8x64xf32>
    %170 = math.exp %169 : vector<8x64xf32>
    %cst_36 = arith.constant 1.000000e+00 : f32
    %171 = vector.broadcast %cst_36 : f32 to vector<8x64xf32>
    %172 = arith.addf %171, %170 : vector<8x64xf32>
    %173 = arith.divf %171, %172 : vector<8x64xf32>
    %174 = vector.extract_strided_slice %167 {offsets = [0, 64], sizes = [8, 64], strides = [1, 1]} : vector<8x256xf32> to vector<8x64xf32>
    %175 = arith.negf %174 : vector<8x64xf32>
    %176 = math.exp %175 : vector<8x64xf32>
    %cst_37 = arith.constant 1.000000e+00 : f32
    %177 = vector.broadcast %cst_37 : f32 to vector<8x64xf32>
    %178 = arith.addf %177, %176 : vector<8x64xf32>
    %179 = arith.divf %177, %178 : vector<8x64xf32>
    %180 = vector.extract_strided_slice %167 {offsets = [0, 128], sizes = [8, 64], strides = [1, 1]} : vector<8x256xf32> to vector<8x64xf32>
    %181 = math.tanh %180 : vector<8x64xf32>
    %182 = vector.extract_strided_slice %167 {offsets = [0, 192], sizes = [8, 64], strides = [1, 1]} : vector<8x256xf32> to vector<8x64xf32>
    %183 = arith.negf %182 : vector<8x64xf32>
    %184 = math.exp %183 : vector<8x64xf32>
    %cst_38 = arith.constant 1.000000e+00 : f32
    %185 = vector.broadcast %cst_38 : f32 to vector<8x64xf32>
    %186 = arith.addf %185, %184 : vector<8x64xf32>
    %187 = arith.divf %185, %186 : vector<8x64xf32>
    %188 = arith.mulf %179, %162 : vector<8x64xf32>
    %189 = arith.mulf %173, %181 : vector<8x64xf32>
    %190 = arith.addf %188, %189 : vector<8x64xf32>
    %191 = math.tanh %190 : vector<8x64xf32>
    %192 = arith.mulf %187, %191 : vector<8x64xf32>
    %193 = vector.extract_strided_slice %21 {offsets = [48, 0], sizes = [8, 256], strides = [1, 1]} : vector<64x256xf32> to vector<8x256xf32>
    %cst_39 = arith.constant dense<0.000000e+00> : vector<8x256xf32>
    %194 = tpu.matmul %192, %22, %cst_39 {dimension_numbers = #tpu.dot_dimension_numbers<[1], [0], [0], [1], [0, 0, 1, 1], [], []>} : vector<8x64xf32>, vector<64x256xf32>, vector<8x256xf32> -> vector<8x256xf32>
    %195 = arith.addf %193, %194 : vector<8x256xf32>
    %196 = vector.extract_strided_slice %195 {offsets = [0, 0], sizes = [8, 64], strides = [1, 1]} : vector<8x256xf32> to vector<8x64xf32>
    %197 = arith.negf %196 : vector<8x64xf32>
    %198 = math.exp %197 : vector<8x64xf32>
    %cst_40 = arith.constant 1.000000e+00 : f32
    %199 = vector.broadcast %cst_40 : f32 to vector<8x64xf32>
    %200 = arith.addf %199, %198 : vector<8x64xf32>
    %201 = arith.divf %199, %200 : vector<8x64xf32>
    %202 = vector.extract_strided_slice %195 {offsets = [0, 64], sizes = [8, 64], strides = [1, 1]} : vector<8x256xf32> to vector<8x64xf32>
    %203 = arith.negf %202 : vector<8x64xf32>
    %204 = math.exp %203 : vector<8x64xf32>
    %cst_41 = arith.constant 1.000000e+00 : f32
    %205 = vector.broadcast %cst_41 : f32 to vector<8x64xf32>
    %206 = arith.addf %205, %204 : vector<8x64xf32>
    %207 = arith.divf %205, %206 : vector<8x64xf32>
    %208 = vector.extract_strided_slice %195 {offsets = [0, 128], sizes = [8, 64], strides = [1, 1]} : vector<8x256xf32> to vector<8x64xf32>
    %209 = math.tanh %208 : vector<8x64xf32>
    %210 = vector.extract_strided_slice %195 {offsets = [0, 192], sizes = [8, 64], strides = [1, 1]} : vector<8x256xf32> to vector<8x64xf32>
    %211 = arith.negf %210 : vector<8x64xf32>
    %212 = math.exp %211 : vector<8x64xf32>
    %cst_42 = arith.constant 1.000000e+00 : f32
    %213 = vector.broadcast %cst_42 : f32 to vector<8x64xf32>
    %214 = arith.addf %213, %212 : vector<8x64xf32>
    %215 = arith.divf %213, %214 : vector<8x64xf32>
    %216 = arith.mulf %207, %190 : vector<8x64xf32>
    %217 = arith.mulf %201, %209 : vector<8x64xf32>
    %218 = arith.addf %216, %217 : vector<8x64xf32>
    %219 = math.tanh %218 : vector<8x64xf32>
    %220 = arith.mulf %215, %219 : vector<8x64xf32>
    %221 = vector.extract_strided_slice %21 {offsets = [56, 0], sizes = [8, 256], strides = [1, 1]} : vector<64x256xf32> to vector<8x256xf32>
    %cst_43 = arith.constant dense<0.000000e+00> : vector<8x256xf32>
    %222 = tpu.matmul %220, %22, %cst_43 {dimension_numbers = #tpu.dot_dimension_numbers<[1], [0], [0], [1], [0, 0, 1, 1], [], []>} : vector<8x64xf32>, vector<64x256xf32>, vector<8x256xf32> -> vector<8x256xf32>
    %223 = arith.addf %221, %222 : vector<8x256xf32>
    %224 = vector.extract_strided_slice %223 {offsets = [0, 0], sizes = [8, 64], strides = [1, 1]} : vector<8x256xf32> to vector<8x64xf32>
    %225 = arith.negf %224 : vector<8x64xf32>
    %226 = math.exp %225 : vector<8x64xf32>
    %cst_44 = arith.constant 1.000000e+00 : f32
    %227 = vector.broadcast %cst_44 : f32 to vector<8x64xf32>
    %228 = arith.addf %227, %226 : vector<8x64xf32>
    %229 = arith.divf %227, %228 : vector<8x64xf32>
    %230 = vector.extract_strided_slice %223 {offsets = [0, 64], sizes = [8, 64], strides = [1, 1]} : vector<8x256xf32> to vector<8x64xf32>
    %231 = arith.negf %230 : vector<8x64xf32>
    %232 = math.exp %231 : vector<8x64xf32>
    %cst_45 = arith.constant 1.000000e+00 : f32
    %233 = vector.broadcast %cst_45 : f32 to vector<8x64xf32>
    %234 = arith.addf %233, %232 : vector<8x64xf32>
    %235 = arith.divf %233, %234 : vector<8x64xf32>
    %236 = vector.extract_strided_slice %223 {offsets = [0, 128], sizes = [8, 64], strides = [1, 1]} : vector<8x256xf32> to vector<8x64xf32>
    %237 = math.tanh %236 : vector<8x64xf32>
    %238 = vector.extract_strided_slice %223 {offsets = [0, 192], sizes = [8, 64], strides = [1, 1]} : vector<8x256xf32> to vector<8x64xf32>
    %239 = arith.negf %238 : vector<8x64xf32>
    %240 = math.exp %239 : vector<8x64xf32>
    %cst_46 = arith.constant 1.000000e+00 : f32
    %241 = vector.broadcast %cst_46 : f32 to vector<8x64xf32>
    %242 = arith.addf %241, %240 : vector<8x64xf32>
    %243 = arith.divf %241, %242 : vector<8x64xf32>
    %244 = arith.mulf %235, %218 : vector<8x64xf32>
    %245 = arith.mulf %229, %237 : vector<8x64xf32>
    %246 = arith.addf %244, %245 : vector<8x64xf32>
    %247 = math.tanh %246 : vector<8x64xf32>
    %248 = arith.mulf %243, %247 : vector<8x64xf32>
    %c0_47 = arith.constant 0 : index
    %c0_48 = arith.constant 0 : index
    %249 = vector.load %arg7[%c0_47, %c0_48] : memref<64x16xf32, #tpu.memory_space<vmem>>, vector<64x16xf32>
    %cst_49 = arith.constant dense<0.000000e+00> : vector<8x16xf32>
    %250 = tpu.matmul %248, %249, %cst_49 {dimension_numbers = #tpu.dot_dimension_numbers<[1], [0], [0], [1], [0, 0, 1, 1], [], []>} : vector<8x64xf32>, vector<64x16xf32>, vector<8x16xf32> -> vector<8x16xf32>
    %c0_50 = arith.constant 0 : index
    %c0_51 = arith.constant 0 : index
    %251 = vector.load %arg8[%c0_50, %c0_51] : memref<1x16xf32, #tpu.memory_space<vmem>>, vector<1x16xf32>
    %252 = vector.broadcast %251 : vector<1x16xf32> to vector<8x16xf32>
    %253 = arith.addf %250, %252 : vector<8x16xf32>
    %c0_52 = arith.constant 0 : index
    %c0_53 = arith.constant 0 : index
    %254 = vector.load %arg9[%c0_52, %c0_53] : memref<64x32xf32, #tpu.memory_space<vmem>>, vector<64x32xf32>
    %cst_54 = arith.constant dense<0.000000e+00> : vector<8x32xf32>
    %255 = tpu.matmul %248, %254, %cst_54 {dimension_numbers = #tpu.dot_dimension_numbers<[1], [0], [0], [1], [0, 0, 1, 1], [], []>} : vector<8x64xf32>, vector<64x32xf32>, vector<8x32xf32> -> vector<8x32xf32>
    %c0_55 = arith.constant 0 : index
    %c0_56 = arith.constant 0 : index
    %256 = vector.load %arg10[%c0_55, %c0_56] : memref<1x32xf32, #tpu.memory_space<vmem>>, vector<1x32xf32>
    %257 = vector.broadcast %256 : vector<1x32xf32> to vector<8x32xf32>
    %258 = arith.addf %255, %257 : vector<8x32xf32>
    %cst_57 = arith.constant 0.000000e+00 : f32
    %259 = vector.broadcast %cst_57 : f32 to vector<8x32xf32>
    %260 = arith.maximumf %258, %259 : vector<8x32xf32>
    %c0_58 = arith.constant 0 : index
    %c0_59 = arith.constant 0 : index
    %261 = vector.load %arg11[%c0_58, %c0_59] : memref<32x16xf32, #tpu.memory_space<vmem>>, vector<32x16xf32>
    %cst_60 = arith.constant dense<0.000000e+00> : vector<8x16xf32>
    %262 = tpu.matmul %260, %261, %cst_60 {dimension_numbers = #tpu.dot_dimension_numbers<[1], [0], [0], [1], [0, 0, 1, 1], [], []>} : vector<8x32xf32>, vector<32x16xf32>, vector<8x16xf32> -> vector<8x16xf32>
    %c0_61 = arith.constant 0 : index
    %c0_62 = arith.constant 0 : index
    %263 = vector.load %arg12[%c0_61, %c0_62] : memref<1x16xf32, #tpu.memory_space<vmem>>, vector<1x16xf32>
    %264 = vector.broadcast %263 : vector<1x16xf32> to vector<8x16xf32>
    %265 = arith.addf %262, %264 : vector<8x16xf32>
    %cst_63 = arith.constant 0.000000e+00 : f32
    %266 = vector.broadcast %cst_63 : f32 to vector<8x32xf32>
    %267 = tpu.concatenate %248, %253, %265, %266 in 1 : vector<8x64xf32>, vector<8x16xf32>, vector<8x16xf32>, vector<8x32xf32> -> vector<8x128xf32>
    %c0_64 = arith.constant 0 : index
    %c0_65 = arith.constant 0 : index
    %268 = vector.load %arg13[%c0_64, %c0_65] : memref<8x128xf32, #tpu.memory_space<vmem>>, vector<8x128xf32>
    tpu.vector_store %arg13[%c0_64, %c0_65], %267 {strides = array<i32>} : memref<8x128xf32, #tpu.memory_space<vmem>>, vector<8x128xf32>,
    return
  }
  func.func @transform_0(%arg0: i32) -> (i32, i32) {
    %c0_i32 = arith.constant 0 : i32
    %c0_i32_0 = arith.constant 0 : i32
    %c0_i32_1 = arith.constant 0 : i32
    return %c0_i32, %c0_i32_0 : i32, i32
  }
  func.func @transform_1(%arg0: i32) -> (i32, i32) {
    %c0_i32 = arith.constant 0 : i32
    %c0_i32_0 = arith.constant 0 : i32
    %c0_i32_1 = arith.constant 0 : i32
    return %c0_i32, %c0_i32_0 : i32, i32
  }
  func.func @transform_2(%arg0: i32) -> (i32, i32) {
    %c0_i32 = arith.constant 0 : i32
    %c0_i32_0 = arith.constant 0 : i32
    %c0_i32_1 = arith.constant 0 : i32
    return %c0_i32, %c0_i32_0 : i32, i32
  }
  func.func @transform_3(%arg0: i32) -> (i32, i32) {
    %c0_i32 = arith.constant 0 : i32
    %c0_i32_0 = arith.constant 0 : i32
    %c0_i32_1 = arith.constant 0 : i32
    return %c0_i32, %c0_i32_0 : i32, i32
  }
  func.func @transform_4(%arg0: i32) -> (i32, i32) {
    %c0_i32 = arith.constant 0 : i32
    %c0_i32_0 = arith.constant 0 : i32
    %c0_i32_1 = arith.constant 0 : i32
    return %c0_i32, %c0_i32_0 : i32, i32
  }
  func.func @transform_5(%arg0: i32) -> (i32, i32) {
    %c0_i32 = arith.constant 0 : i32
    %c0_i32_0 = arith.constant 0 : i32
    %c0_i32_1 = arith.constant 0 : i32
    return %c0_i32, %c0_i32_0 : i32, i32
  }
  func.func @transform_6(%arg0: i32) -> (i32, i32) {
    %c0_i32 = arith.constant 0 : i32
    %c0_i32_0 = arith.constant 0 : i32
    %c0_i32_1 = arith.constant 0 : i32
    return %c0_i32, %c0_i32_0 : i32, i32
  }
  func.func @transform_7(%arg0: i32) -> (i32, i32) {
    %c0_i32 = arith.constant 0 : i32
    %c0_i32_0 = arith.constant 0 : i32
    %c0_i32_1 = arith.constant 0 : i32
    return %c0_i32, %c0_i32_0 : i32, i32
  }
  func.func @transform_8(%arg0: i32) -> (i32, i32) {
    %c0_i32 = arith.constant 0 : i32
    %c0_i32_0 = arith.constant 0 : i32
    %c0_i32_1 = arith.constant 0 : i32
    return %c0_i32, %c0_i32_0 : i32, i32
  }
  func.func @transform_9(%arg0: i32) -> (i32, i32) {
    %c0_i32 = arith.constant 0 : i32
    %c0_i32_0 = arith.constant 0 : i32
    %c0_i32_1 = arith.constant 0 : i32
    return %c0_i32, %c0_i32_0 : i32, i32
  }
  func.func @transform_10(%arg0: i32) -> (i32, i32) {
    %c0_i32 = arith.constant 0 : i32
    %c0_i32_0 = arith.constant 0 : i32
    %c0_i32_1 = arith.constant 0 : i32
    return %c0_i32, %c0_i32_0 : i32, i32
  }
  func.func @transform_11(%arg0: i32) -> (i32, i32) {
    %c0_i32 = arith.constant 0 : i32
    %c0_i32_0 = arith.constant 0 : i32
    %c0_i32_1 = arith.constant 0 : i32
    return %c0_i32, %c0_i32_0 : i32, i32
  }
  func.func @transform_12(%arg0: i32) -> (i32, i32) {
    %c0_i32 = arith.constant 0 : i32
    %c0_i32_0 = arith.constant 0 : i32
    %c0_i32_1 = arith.constant 0 : i32
    return %c0_i32, %c0_i32_0 : i32, i32
  }
}

</mosaic_0001>

<bundles_post_ra>
// kernel: rcl4er_forward.1
= control target key start
LH: loop header
LB: loop body
LE: loop exit
PB: predicated region body
PF: predicated region fallthrough
CT: control target
= control target key end

     0   :  { %v2046_v0 = vmov 0   ;;  %v2047_v11 = vmov 0.0   ;;  %v73_v46 = vlaneseq  ;;  %vm170_vm5 = vcmask 392192   ;;  %s2583_s0 = inlined_call_operand.vmem [shape: s32[64,1], index: 0, kind: input, shape index: {}]   ;;  %s2584_s1 = inlined_call_operand.vmem [shape: s32[64,1], index: 1, kind: input, shape index: {}]   ;;  %s2585_s2 = inlined_call_operand.vmem [shape: f32[48,64], index: 2, kind: input, shape index: {}]   ;;  %s2586_s3 = inlined_call_operand.vmem [shape: f32[64,256], index: 3, kind: input, shape index: {}]   ;;  %s2587_s4 = inlined_call_operand.vmem [shape: f32[64,256], index: 4, kind: input, shape index: {}]   ;;  %s2588_s5 = inlined_call_operand.vmem [shape: f32[1,256], index: 5, kind: input, shape index: {}]   ;;  %s2589_s6 = inlined_call_operand.vmem [shape: f32[64,16], index: 6, kind: input, shape index: {}]   ;;  %s2590_s8 = inlined_call_operand.vmem [shape: f32[64,32], index: 8, kind: input, shape index: {}]   ;;  %s2591_s10 = inlined_call_operand.vmem [shape: f32[32,16], index: 10, kind: input, shape index: {}]   ;;  %s2592_s7 = inlined_call_operand.vmem [shape: f32[1,16], index: 7, kind: input, shape index: {}]   ;;  %s2593_s9 = inlined_call_operand.vmem [shape: f32[1,32], index: 9, kind: input, shape index: {}]   ;;  %s2594_s11 = inlined_call_operand.vmem [shape: f32[1,16], index: 11, kind: input, shape index: {}]   ;;  %s2595_s12 = inlined_call_operand.vmem [shape: f32[8,128], index: 12, kind: output, shape index: {}]  }
   0x1   :  { %1949 = vset.pattern.permute.xlu1 %v2046_v0  ;;  %1948 = vset.pattern.permute.xlu0 %v2046_v0  ;;  %v42_v1 = vld [vmem:[%s2583_s0 + $0x8] sm:$0xff]  ;;  %v41_v3 = vld [vmem:[%s2583_s0] sm:$0xff]  ;;  %v51_v6 = vld [vmem:[%s2584_s1 + $0x10] sm:$0xff] }
   0x2   :  { %v50_v2 = vld [vmem:[%s2584_s1 + $0x8] sm:$0xff]  ;;  %79 = vperm.xlu1 %1949, %v42_v1   ;;  %v49_v5 = vld [vmem:[%s2584_s1] sm:$0xff]  ;;  %76 = vperm.xlu0 %1948, %v41_v3   ;;  %v43_v8 = vld [vmem:[%s2583_s0 + $0x10] sm:$0xff]  ;;  %v59_v9 = vmul.u32 16, %v51_v6  ;;  %v2191_v47 = vand.u32 127, %v73_v46 }
   0x3   :  { %v58_v4 = vmul.u32 16, %v50_v2  ;;  %v57_v7 = vmul.u32 16, %v49_v5  ;;  %v52_v10 = vld [vmem:[%s2584_s1 + $0x18] sm:$0xff]  ;;  %649 = vmatprep.mubr.f32.mxu1 %v2047_v11  ;;  %v164_v17 = vld [vmem:[%s2585_s2] sm:$0xff]  ;;  %v165_v18 = vld [vmem:[%s2585_s2 + $0x8] sm:$0xff] }
   0x4   :  { %v67_v14 = vadd.s32 %v59_v9, %v43_v8  ;;  %v44_v15 = vld [vmem:[%s2583_s0 + $0x18] sm:$0xff]  ;;  %v60_v16 = vmul.u32 16, %v52_v10  ;;  %v53_v19 = vld [vmem:[%s2584_s1 + $0x20] sm:$0xff]  ;;  %v1724_v20 = vpack.c.bf16 %v165_v18, %v164_v17  ;;  %v166_v21 = vld [vmem:[%s2585_s2 + $0x10] sm:$0xff]  ;;  %v2194_v50 = vadd.s32 4294967280, %v2191_v47 }
   0x5   :  { %v66_v12 = vadd.s32 %v58_v4, %v42_v1  ;;  %v65_v13 = vadd.s32 %v57_v7, %v41_v3  ;;  %v167_v22 = vld [vmem:[%s2585_s2 + $0x18] sm:$0xff]  ;;  %v168_v24 = vld [vmem:[%s2585_s2 + $0x20] sm:$0xff]  ;;  %v169_v25 = vld [vmem:[%s2585_s2 + $0x28] sm:$0xff]  ;;  %v61_v27 = vmul.u32 16, %v53_v19 }
   0x6   :  { %v1728_v23 = vpack.c.bf16 %v167_v22, %v166_v21  ;;  %1725 = vmatprep.subr.bf16.mxu0 %v1724_v20  ;;  %v68_v26 = vadd.s32 %v60_v16, %v44_v15  ;;  %v45_v28 = vld [vmem:[%s2583_s0 + $0x20] sm:$0xff]  ;;  %v54_v29 = vld [vmem:[%s2584_s1 + $0x28] sm:$0xff]  ;;  %v1732_v30 = vpack.c.bf16 %v169_v25, %v168_v24  ;;  %v55_v34 = vld [vmem:[%s2584_s1 + $0x30] sm:$0xff] }
   0x7   :  { %112 = vperm.xlu1 %1949, %v66_v12   ;;  %109 = vperm.xlu0 %1948, %v65_v13   ;;  %v69_v31 = vadd.s32 %v61_v27, %v45_v28  ;;  %v62_v32 = vmul.u32 16, %v54_v29  ;;  %v46_v33 = vld [vmem:[%s2583_s0 + $0x28] sm:$0xff]  ;;  %v63_v36 = vmul.u32 16, %v55_v34  ;;  %v47_v37 = vld [vmem:[%s2583_s0 + $0x30] sm:$0xff]  ;;  %v56_v38 = vld [vmem:[%s2584_s1 + $0x38] sm:$0xff] }
   0x8   :  { %1727 = vmatpush3.bf16.msra.mxu0 %v1724_v20  ;;  %v64_v40 = vmul.u32 16, %v56_v38  ;;  %v48_v41 = vld [vmem:[%s2583_s0 + $0x38] sm:$0xff]  ;;  %v301_v43 = vld [vmem:[%s2586_s3 + $0x8] sm:$0xff]  ;;  %v300_v52 = vld [vmem:[%s2586_s3] sm:$0xff] }
   0x9   :  { %1729 = vmatprep.subr.bf16.mxu0 %v1728_v23  ;;  %v70_v35 = vadd.s32 %v62_v32, %v46_v33  ;;  %v71_v39 = vadd.s32 %v63_v36, %v47_v37  ;;  %v303_v44 = vld [vmem:[%s2586_s3 + $0x18] sm:$0xff]  ;;  %v302_v53 = vld [vmem:[%s2586_s3 + $0x10] sm:$0xff]  ;;  %v305_v55 = vld [vmem:[%s2586_s3 + $0x28] sm:$0xff] }
   0xa   :  { %v72_v42 = vadd.s32 %v64_v40, %v48_v41  ;;  %v1736_v45 = vpack.c.bf16 %v303_v44, %v301_v43  ;;  %v307_v56 = vld [vmem:[%s2586_s3 + $0x38] sm:$0xff]  ;;  %v1738_v58 = vpack.c.bf16 %v302_v53, %v300_v52  ;;  %v304_v62 = vld [vmem:[%s2586_s3 + $0x20] sm:$0xff]  ;;  %v306_v63 = vld [vmem:[%s2586_s3 + $0x30] sm:$0xff] }
   0xb   :  { %115 = vperm.xlu1 %1949, %v67_v14   ;;  %82 = vperm.xlu0 %1948, %v43_v8   ;;  %v1740_v61 = vpack.c.bf16 %v307_v56, %v305_v55  ;;  %v309_v1 = vld [vmem:[%s2586_s3 + $0x48] sm:$0xff]  ;;  %v311_v2 = vld [vmem:[%s2586_s3 + $0x58] sm:$0xff]  ;;  %v1742_v3 = vpack.c.bf16 %v306_v63, %v304_v62  ;;  %v308_v7 = vld [vmem:[%s2586_s3 + $0x40] sm:$0xff] }
   0xc   :  { %1731 = vmatpush3.bf16.msra.mxu0 %v1728_v23  ;;  %v1744_v6 = vpack.c.bf16 %v311_v2, %v309_v1  ;;  %v310_v8 = vld [vmem:[%s2586_s3 + $0x50] sm:$0xff]  ;;  %v313_v10 = vld [vmem:[%s2586_s3 + $0x68] sm:$0xff]  ;;  %v315_v12 = vld [vmem:[%s2586_s3 + $0x78] sm:$0xff] }
   0xd   :  { %1733 = vmatprep.subr.bf16.mxu0 %v1732_v30  ;;  %v1746_v13 = vpack.c.bf16 %v310_v8, %v308_v7  ;;  %v1748_v16 = vpack.c.bf16 %v315_v12, %v313_v10  ;;  %v312_v17 = vld [vmem:[%s2586_s3 + $0x60] sm:$0xff]  ;;  %v314_v18 = vld [vmem:[%s2586_s3 + $0x70] sm:$0xff]  ;;  %v469_v32 = vld [vmem:[%s2587_s4 + $0x18] sm:$0xff] }
   0xe   :  { %v1750_v20 = vpack.c.bf16 %v314_v18, %v312_v17  ;;  %v473_v38 = vld [vmem:[%s2587_s4 + $0x38] sm:$0xff]  ;;  %v470_v40 = vld [vmem:[%s2587_s4 + $0x20] sm:$0xff]  ;;  %v475_v43 = vld [vmem:[%s2587_s4 + $0x48] sm:$0xff] }
   0xf   :  { %118 = vperm.xlu1 %1949, %v68_v26   ;;  %85 = vperm.xlu0 %1948, %v44_v15   ;;  %v477_v44 = vld [vmem:[%s2587_s4 + $0x58] sm:$0xff]  ;;  %v478_v53 = vld [vmem:[%s2587_s4 + $0x60] sm:$0xff] }
  0x10   :  { %1735 = vmatpush3.bf16.msra.mxu0 %v1732_v30  ;;  %v316_v2 = vld [vmem:[%s2588_s5] sm:$0x3]  ;;  %s2048_s5 = smov 64  }
  0x11   :  { %1737 = vmatprep.subr.bf16.mxu0 %v1736_v45  ;;  %v2314_v45 = vpack.c.bf16 %v477_v44, %v475_v43 }
  0x13   :  { %121 = vperm.xlu1 %1949, %v69_v31   ;;  %88 = vperm.xlu0 %1948, %v45_v28   ;;  %v467_v31 = vld [vmem:[%s2587_s4 + $0x8] sm:$0xff] }
  0x14   :  { %v2280_v34 = vpack.c.bf16 %v469_v32, %v467_v31 }
  0x16   :  { %1769 = vmatprep.subr.bf16.mxu1 %v2280_v34 }
  0x17   :  { %124 = vperm.xlu1 %1949, %v70_v35   ;;  %91 = vperm.xlu0 %1948, %v46_v33   ;;  %v466_v33 = vld [vmem:[%s2587_s4] sm:$0xff]  ;;  %v468_v35 = vld [vmem:[%s2587_s4 + $0x10] sm:$0xff] }
  0x18   :  { %v2285_v36 = vpack.c.bf16 %v468_v35, %v466_v33 }
  0x1a   :  { %1771 = vmatpush1.bf16.msra.mxu1 %v2285_v36 }
  0x1b   :  { %127 = vperm.xlu1 %1949, %v71_v39   ;;  %94 = vperm.xlu0 %1948, %v47_v37   ;;  %v471_v37 = vld [vmem:[%s2587_s4 + $0x28] sm:$0xff] }
  0x1c   :  { %v2296_v39 = vpack.c.bf16 %v473_v38, %v471_v37 }
  0x1e   :  { %1773 = vmatprep.subr.bf16.mxu1 %v2296_v39 }
  0x1f   :  { %130 = vperm.xlu1 %1949, %v72_v42   ;;  %97 = vperm.xlu0 %1948, %v48_v41   ;;  %v472_v41 = vld [vmem:[%s2587_s4 + $0x30] sm:$0xff] }
  0x20   :  { %v2304_v42 = vpack.c.bf16 %v472_v41, %v470_v40 }
  0x22   :  { %1775 = vmatpush1.bf16.msra.mxu1 %v2304_v42 }
  0x23   :  { %1777 = vmatprep.subr.bf16.mxu1 %v2314_v45 }
  0x81   :  { %v80_v48 = vpop.permute.xlu1 %79  ;;  %v77_v49 = vpop.permute.xlu0 %76 }
  0x82   :  { %vm100_vm0 = vcmp.eq.s32.totalorder %v2191_v47, %v80_v48  ;;  %vm99_vm2 = vcmp.eq.s32.totalorder %v2191_v47, %v77_v49  ;;  %v476_v48 = vld [vmem:[%s2587_s4 + $0x50] sm:$0xff] }
  0x86   :  { %v113_v51 = vpop.permute.xlu1 %112  ;;  %v110_v54 = vpop.permute.xlu0 %109 }
  0x87   :  { %vm133_vm1 = vcmp.eq.s32.totalorder %v2194_v50, %v113_v51  ;;  %vm132_vm4 = vcmp.eq.s32.totalorder %v2194_v50, %v110_v54  ;;  %v481_v51 = vld [vmem:[%s2587_s4 + $0x78] sm:$0xff]  ;;  %v480_v54 = vld [vmem:[%s2587_s4 + $0x70] sm:$0xff] }
  0x88   :  { %vm141_vm3 = vmor %vm100_vm0, %vm133_vm1  ;;  %v2340_v55 = vpack.c.bf16 %v480_v54, %v478_v53 }
  0x89   :  { %v1562_v57 = vsel %vm141_vm3, 1.0, %v2047_v11  ;;  %vm140_vm6 = vmor %vm99_vm2, %vm132_vm4 }
  0x8a   :  { %v116_v59 = vpop.permute.xlu1 %115  ;;  %v1561_v60 = vsel %vm140_vm6, 1.0, %v2047_v11  ;;  %v83_v0 = vpop.permute.xlu0 %82 }
  0x8b   :  { %vm134_vm7 = vcmp.eq.s32.totalorder %v2194_v50, %v116_v59  ;;  %1663 = vmatprep.mubr.msk.f32.mxu0 %vm170_vm5, %v1561_v60  ;;  %vm101_vm8 = vcmp.eq.s32.totalorder %v2191_v47, %v83_v0  ;;  %v319_v0 = vshrl.u32 %v73_v46, 7 }
  0x8c   :  { %1664 = vmatmul.mubr.msk.f32.vlgmr.msra.gmra.mrb[0].mxu0 %vm170_vm5, %v1562_v57  ;;  %vm142_vm9 = vmor %vm101_vm8, %vm134_vm7 }
  0x8d   :  { %1739 = vmatpush1.bf16.msra.mxu0 %v1738_v58  ;;  %v1563_v4 = vsel %vm142_vm9, 1.0, %v2047_v11  ;;  %v320_v1 = vsub.s32 0, %v319_v0 }
  0x8e   :  { %v119_v5 = vpop.permute.xlu1 %118  ;;  %1741 = vmatprep.subr.bf16.mxu0 %v1740_v61  ;;  %1666 = vmatprep.mubr.msk.f32.mxu0 %vm170_vm5, %v1563_v4  ;;  %v86_v9 = vpop.permute.xlu0 %85 }
  0x8f   :  { %vm135_vm10 = vcmp.eq.s32.totalorder %v2194_v50, %v119_v5  ;;  %vm102_vm11 = vcmp.eq.s32.totalorder %v2191_v47, %v86_v9  ;;  %v321_v4 = vrot.slane %v316_v2, %v320_v1 }
  0x90   :  { %vm143_vm12 = vmor %vm102_vm11, %vm135_vm10  ;;  %vm2050_vm10 = vmmov 0   ;;  %vm1467_vm11 = vcmask 261120  }
  0x91   :  { %1743 = vmatpush1.bf16.msra.mxu0 %v1742_v3  ;;  %v1564_v14 = vsel %vm143_vm12, 1.0, %v2047_v11  ;;  %v324_v3 = vsub.s32 1, %v319_v0  ;;  %vm1551_vm12 = vcmask 654336  }
  0x92   :  { %v122_v15 = vpop.permute.xlu1 %121  ;;  %1745 = vmatprep.subr.bf16.mxu0 %v1744_v6  ;;  %1667 = vmatmul.mubr.msk.f32.gmra.mrb[2].mxu0 %vm170_vm5, %v1564_v14  ;;  %v89_v19 = vpop.permute.xlu0 %88 }
  0x93   :  { %vm136_vm13 = vcmp.eq.s32.totalorder %v2194_v50, %v122_v15  ;;  %vm103_vm14 = vcmp.eq.s32.totalorder %v2191_v47, %v89_v19  ;;  %v325_v5 = vrot.slane %v316_v2, %v324_v3 }
  0x94   :  { %vm144_vm15 = vmor %vm103_vm14, %vm136_vm13  ;;  %vm1553_vm13 = vcmask 785408  }
  0x95   :  { %1747 = vmatpush1.bf16.msra.mxu0 %v1746_v13  ;;  %v1565_v21 = vsel %vm144_vm15, 1.0, %v2047_v11 }
  0x96   :  { %v125_v22 = vpop.permute.xlu1 %124  ;;  %1749 = vmatprep.subr.bf16.mxu0 %v1748_v16  ;;  %1669 = vmatprep.mubr.msk.f32.mxu0 %vm170_vm5, %v1565_v21  ;;  %v92_v23 = vpop.permute.xlu0 %91 }
  0x97   :  { %vm137_vm0 = vcmp.eq.s32.totalorder %v2194_v50, %v125_v22  ;;  %vm104_vm1 = vcmp.eq.s32.totalorder %v2191_v47, %v92_v23 }
  0x98   :  { %vm145_vm2 = vmor %vm104_vm1, %vm137_vm0 }
  0x99   :  { %1751 = vmatpush1.bf16.msra.mxu0 %v1750_v20  ;;  %v1566_v24 = vsel %vm145_vm2, 1.0, %v2047_v11 }
  0x9a   :  { %v128_v25 = vpop.permute.xlu1 %127  ;;  %1670 = vmatmul.mubr.msk.f32.gmra.mrb[4].mxu0 %vm170_vm5, %v1566_v24  ;;  %v95_v26 = vpop.permute.xlu0 %94  ;;  %1753 = vmatprep.subr.bf16.mxu0 %v2280_v34 }
  0x9b   :  { %vm138_vm3 = vcmp.eq.s32.totalorder %v2194_v50, %v128_v25  ;;  %vm105_vm4 = vcmp.eq.s32.totalorder %v2191_v47, %v95_v26 }
  0x9c   :  { %vm146_vm6 = vmor %vm105_vm4, %vm138_vm3 }
  0x9d   :  { %v1567_v27 = vsel %vm146_vm6, 1.0, %v2047_v11 }
  0x9e   :  { %v131_v28 = vpop.permute.xlu1 %130  ;;  %1672 = vmatprep.mubr.msk.f32.mxu0 %vm170_vm5, %v1567_v27  ;;  %v98_v29 = vpop.permute.xlu0 %97 }
  0x9f   :  { %vm139_vm7 = vcmp.eq.s32.totalorder %v2194_v50, %v131_v28  ;;  %vm106_vm8 = vcmp.eq.s32.totalorder %v2191_v47, %v98_v29  ;;  %v474_v47 = vld [vmem:[%s2587_s4 + $0x40] sm:$0xff]  ;;  %v479_v50 = vld [vmem:[%s2587_s4 + $0x68] sm:$0xff] }
  0xa0   :  { %vm147_vm9 = vmor %vm106_vm8, %vm139_vm7  ;;  %v2322_v49 = vpack.c.bf16 %v476_v48, %v474_v47  ;;  %v2332_v52 = vpack.c.bf16 %v481_v51, %v479_v50 }
  0xa1   :  { %v1568_v30 = vsel %vm147_vm9, 1.0, %v2047_v11 }
  0xa2   :  { %1673 = vmatmul.mubr.msk.f32.gmra.mrb[6].mxu0 %vm170_vm5, %v1568_v30  ;;  %1779 = vmatpush1.bf16.msra.mxu1 %v2322_v49  ;;  %vm328_vm5 = vcmask 523264  }
  0xa3   :  { %417 = vmatprep.mubr.f32.mxu0 %v2047_v11  ;;  %1781 = vmatprep.subr.bf16.mxu1 %v2332_v52 }
  0xa6   :  { %1783 = vmatpush1.bf16.msra.mxu1 %v2340_v55 }
  0xa7   :  { %1785 = vmatprep.subr.bf16.mxu1 %v2280_v34 }
 0x15f   :  { %v1665_v56 = vpop.f32.mrb[0].mxu0 }
 0x160   :  { %v261_v57 = vpop.f32.mrb[1].mxu0 }
 0x161   :  { %1577 = vmatmul.mubr.msk.f32.vlgmr.msra.gmra.mrb[8].mxu0 %vm328_vm5, %v261_v57 }
 0x162   :  { %1755 = vmatpush1.bf16.msra.mxu0 %v2285_v36  ;;  %423 = vmatprep.mubr.f32.mxu0 %v2047_v11 }
 0x163   :  { %1757 = vmatprep.subr.bf16.mxu0 %v2296_v39 }
 0x165   :  { %1578 = vmatmul.mubr.msk.f32.gmra.mrb[10].mxu0 %vm328_vm5, %v1665_v56  ;;  %v1668_v58 = vpop.f32.mrb[2].mxu0 }
 0x166   :  { %429 = vmatprep.mubr.f32.mxu0 %v2047_v11  ;;  %1759 = vmatpush1.bf16.msra.mxu0 %v2304_v42  ;;  %v271_v59 = vpop.f32.mrb[3].mxu0 }
 0x167   :  { %1761 = vmatprep.subr.bf16.mxu0 %v2314_v45 }
 0x169   :  { %1579 = vmatmul.mubr.msk.f32.gmra.mrb[12].mxu0 %vm328_vm5, %v271_v59 }
 0x16a   :  { %435 = vmatprep.mubr.f32.mxu0 %v2047_v11  ;;  %1763 = vmatpush1.bf16.msra.mxu0 %v2322_v49 }
 0x16b   :  { %1765 = vmatprep.subr.bf16.mxu0 %v2332_v52 }
 0x16d   :  { %1580 = vmatmul.mubr.msk.f32.gmra.mrb[14].mxu0 %vm328_vm5, %v1668_v58  ;;  %v1671_v60 = vpop.f32.mrb[4].mxu0 }
 0x16e   :  { %441 = vmatprep.mubr.f32.mxu0 %v2047_v11  ;;  %1767 = vmatpush1.bf16.msra.mxu0 %v2340_v55  ;;  %v281_v61 = vpop.f32.mrb[5].mxu0 }
 0x171   :  { %1581 = vmatmul.mubr.msk.f32.gmra.mrb[16].mxu0 %vm328_vm5, %v281_v61 }
 0x172   :  { %447 = vmatprep.mubr.f32.mxu0 %v2047_v11 }
 0x175   :  { %1582 = vmatmul.mubr.msk.f32.gmra.mrb[18].mxu0 %vm328_vm5, %v1671_v60  ;;  %v1674_v62 = vpop.f32.mrb[6].mxu0 }
 0x176   :  { %453 = vmatprep.mubr.f32.mxu0 %v2047_v11  ;;  %v291_v63 = vpop.f32.mrb[7].mxu0 }
 0x179   :  { %1583 = vmatmul.mubr.msk.f32.gmra.mrb[20].mxu0 %vm328_vm5, %v291_v63 }
 0x17a   :  { %459 = vmatprep.mubr.f32.mxu0 %v2047_v11 }
 0x17d   :  { %1584 = vmatmul.mubr.msk.f32.gmra.mrb[22].mxu0 %vm328_vm5, %v1674_v62 }
 0x17e   :  { %549 = vmatprep.mubr.f32.mxu0 %v2047_v11 }
 0x181   :  { %550 = vmatmul.mubr.f32.vlgmr.msra.gmra.mrb[8].mxu0 %v2047_v11 }
 0x182   :  { %1691 = vmatprep.mubr.msk.f32.mxu0 %vm2050_vm10, %v2047_v11 }
 0x238   :  { %v425_v6 = vpop.f32.mrb[10].mxu0 }
 0x239   :  { %v2373_v7 = vadd.f32 %v425_v6, %v321_v4  ;;  %v427_v8 = vpop.f32.mrb[11].mxu0 }
 0x23a   :  { %v2375_v9 = vadd.f32 %v427_v8, %v325_v5 }
 0x23c   :  { %v431_v10 = vpop.f32.mrb[12].mxu0 }
 0x23d   :  { %v2377_v12 = vadd.f32 %v431_v10, %v321_v4  ;;  %v433_v13 = vpop.f32.mrb[13].mxu0 }
 0x23e   :  { %v2379_v14 = vadd.f32 %v433_v13, %v325_v5 }
 0x240   :  { %v437_v46 = vpop.f32.mrb[14].mxu0 }
 0x241   :  { %v2381_v15 = vadd.f32 %v437_v46, %v321_v4  ;;  %v439_v16 = vpop.f32.mrb[15].mxu0 }
 0x242   :  { %v2383_v17 = vadd.f32 %v439_v16, %v325_v5 }
 0x244   :  { %v443_v18 = vpop.f32.mrb[16].mxu0 }
 0x245   :  { %v2385_v19 = vadd.f32 %v443_v18, %v321_v4  ;;  %v445_v20 = vpop.f32.mrb[17].mxu0 }
 0x246   :  { %v2387_v21 = vadd.f32 %v445_v20, %v325_v5 }
 0x248   :  { %v449_v22 = vpop.f32.mrb[18].mxu0 }
 0x249   :  { %v2389_v23 = vadd.f32 %v449_v22, %v321_v4  ;;  %v451_v24 = vpop.f32.mrb[19].mxu0 }
 0x24a   :  { %v2391_v25 = vadd.f32 %v451_v24, %v325_v5 }
 0x24c   :  { %v455_v26 = vpop.f32.mrb[20].mxu0 }
 0x24d   :  { %v2393_v27 = vadd.f32 %v455_v26, %v321_v4  ;;  %v457_v28 = vpop.f32.mrb[21].mxu0 }
 0x24e   :  { %v2395_v29 = vadd.f32 %v457_v28, %v325_v5 }
 0x250   :  { %v461_v30 = vpop.f32.mrb[22].mxu0 }
 0x251   :  { %v2397_v31 = vadd.f32 %v461_v30, %v321_v4  ;;  %v463_v32 = vpop.f32.mrb[23].mxu0 }
 0x252   :  { %v2399_v33 = vadd.f32 %v463_v32, %v325_v5 }
 0x254   :  { %v551_v35 = vpop.f32.mrb[8].mxu0 }
 0x255   :  { %v1910_v37 = vadd.f32 %v551_v35, %v321_v4  ;;  %v553_v38 = vpop.f32.mrb[9].mxu0 }
 0x256   :  { %v1911_v41 = vadd.f32 %v553_v38, %v325_v5 }
 0x257   :  { %v1585_v40 = vmul.f32 -1.442695, %v1910_v37 }
 0x258   :  { %v1586_v51 = vmul.f32 -1.442695, %v1911_v41 }
 0x259   :  { %1950 = vpow2.f32 %v1585_v40 }
 0x25a   :  { %1952 = vtanh.f32 %v1911_v41 }
 0x263   :  { %v1951_v43 = vpop.eup %1950 }
 0x264   :  { %v561_v44 = vadd.f32 1.0, %v1951_v43  ;;  %v1953_v47 = vpop.eup %1952 }
 0x266   :  { %1954 = vrcp.f32 %v561_v44 }
 0x267   :  { %1956 = vpow2.f32 %v1586_v51 }
 0x270   :  { %v1955_v48 = vpop.eup %1954 }
 0x271   :  { %v572_v50 = vmul.f32 %v1955_v48, %v1953_v47  ;;  %v1957_v53 = vpop.eup %1956  ;;  %v571_v56 = vmul.f32 0.0, %v1955_v48 }
 0x272   :  { %v568_v54 = vadd.f32 1.0, %v1957_v53 }
 0x273   :  { %574 = vrot.lane.b32.xlu0 %v572_v50, %s2048_s5 }
 0x274   :  { %1958 = vrcp.f32 %v568_v54 }
 0x27e   :  { %v1959_v59 = vpop.eup %1958 }
 0x2e5   :  { %v575_v57 = vpop.permute.xlu0 %574 }
 0x2e6   :  { %v577_v58 = vadd.f32 %v575_v57, %v571_v56 }
 0x2e8   :  { %1960 = vtanh.f32 %v577_v58 }
 0x2f2   :  { %v1961_v60 = vpop.eup %1960 }
 0x2f3   :  { %v579_v61 = vmul.f32 %v1961_v60, %v1959_v59 }
 0x2f5   :  { %581 = vrot.lane.b32.xlu1 %v579_v61, %s2048_s5 }
 0x367   :  { %v582_v62 = vpop.permute.xlu1 %581 }
 0x368   :  { %1587 = vmatmul.mubr.msk.f32.vlgmr.msra.gmra.mrb[0].mxu1 %vm328_vm5, %v582_v62 }
 0x369   :  { %1787 = vmatpush1.bf16.msra.mxu1 %v2285_v36  ;;  %749 = vmatprep.mubr.f32.mxu1 %v2047_v11 }
 0x36a   :  { %1789 = vmatprep.subr.bf16.mxu1 %v2296_v39 }
 0x36d   :  { %1791 = vmatpush1.bf16.msra.mxu1 %v2304_v42 }
 0x36e   :  { %1793 = vmatprep.subr.bf16.mxu1 %v2314_v45 }
 0x371   :  { %1795 = vmatpush1.bf16.msra.mxu1 %v2322_v49 }
 0x372   :  { %1797 = vmatprep.subr.bf16.mxu1 %v2332_v52 }
 0x375   :  { %1799 = vmatpush1.bf16.msra.mxu1 %v2340_v55 }
 0x376   :  { %1801 = vmatprep.subr.bf16.mxu1 %v2280_v34 }
 0x43b   :  { %v651_v63 = vpop.f32.mrb[0].mxu1 }
 0x43c   :  { %v656_v0 = vadd.f32 %v651_v63, %v2373_v7  ;;  %v653_v1 = vpop.f32.mrb[1].mxu1 }
 0x43d   :  { %v657_v2 = vadd.f32 %v653_v1, %v2375_v9 }
 0x43e   :  { %v1588_v3 = vmul.f32 -1.442695, %v656_v0 }
 0x43f   :  { %v1589_v13 = vmul.f32 -1.442695, %v657_v2 }
 0x440   :  { %1962 = vpow2.f32 %v1588_v3 }
 0x441   :  { %1964 = vtanh.f32 %v657_v2 }
 0x44a   :  { %v1963_v4 = vpop.eup %1962 }
 0x44b   :  { %v661_v5 = vadd.f32 1.0, %v1963_v4  ;;  %v1965_v6 = vpop.eup %1964 }
 0x44d   :  { %1966 = vrcp.f32 %v661_v5 }
 0x44e   :  { %1968 = vpow2.f32 %v1589_v13 }
 0x457   :  { %v1967_v8 = vpop.eup %1966 }
 0x458   :  { %v672_v10 = vmul.f32 %v1967_v8, %v1965_v6  ;;  %v1969_v46 = vpop.eup %1968  ;;  %v671_v18 = vmul.f32 %v1967_v8, %v577_v58 }
 0x459   :  { %v668_v16 = vadd.f32 1.0, %v1969_v46 }
 0x45a   :  { %674 = vrot.lane.b32.xlu0 %v672_v10, %s2048_s5 }
 0x45b   :  { %1970 = vrcp.f32 %v668_v16 }
 0x465   :  { %v1971_v9 = vpop.eup %1970 }
 0x4cc   :  { %v675_v7 = vpop.permute.xlu0 %674 }
 0x4cd   :  { %v677_v20 = vadd.f32 %v675_v7, %v671_v18 }
 0x4cf   :  { %1972 = vtanh.f32 %v677_v20 }
 0x4d9   :  { %v1973_v22 = vpop.eup %1972 }
 0x4da   :  { %v679_v24 = vmul.f32 %v1973_v22, %v1971_v9 }
 0x4dc   :  { %681 = vrot.lane.b32.xlu1 %v679_v24, %s2048_s5 }
 0x54e   :  { %v682_v26 = vpop.permute.xlu1 %681 }
 0x54f   :  { %1590 = vmatmul.mubr.msk.f32.vlgmr.msra.gmra.mrb[2].mxu1 %vm328_vm5, %v682_v26 }
 0x550   :  { %1803 = vmatpush1.bf16.msra.mxu1 %v2285_v36  ;;  %849 = vmatprep.mubr.f32.mxu1 %v2047_v11 }
 0x551   :  { %1805 = vmatprep.subr.bf16.mxu1 %v2296_v39 }
 0x554   :  { %1807 = vmatpush1.bf16.msra.mxu1 %v2304_v42 }
 0x555   :  { %1809 = vmatprep.subr.bf16.mxu1 %v2314_v45 }
 0x558   :  { %1811 = vmatpush1.bf16.msra.mxu1 %v2322_v49 }
 0x559   :  { %1813 = vmatprep.subr.bf16.mxu1 %v2332_v52 }
 0x55c   :  { %1815 = vmatpush1.bf16.msra.mxu1 %v2340_v55 }
 0x55d   :  { %1817 = vmatprep.subr.bf16.mxu1 %v2280_v34 }
 0x622   :  { %v751_v28 = vpop.f32.mrb[2].mxu1 }
 0x623   :  { %v756_v30 = vadd.f32 %v751_v28, %v2377_v12  ;;  %v753_v32 = vpop.f32.mrb[3].mxu1 }
 0x624   :  { %v757_v35 = vadd.f32 %v753_v32, %v2379_v14 }
 0x625   :  { %v1591_v37 = vmul.f32 -1.442695, %v756_v30 }
 0x626   :  { %v1592_v47 = vmul.f32 -1.442695, %v757_v35 }
 0x627   :  { %1974 = vpow2.f32 %v1591_v37 }
 0x628   :  { %1976 = vtanh.f32 %v757_v35 }
 0x631   :  { %v1975_v38 = vpop.eup %1974 }
 0x632   :  { %v761_v40 = vadd.f32 1.0, %v1975_v38  ;;  %v1977_v41 = vpop.eup %1976 }
 0x634   :  { %1978 = vrcp.f32 %v761_v40 }
 0x635   :  { %1980 = vpow2.f32 %v1592_v47 }
 0x63e   :  { %v1979_v43 = vpop.eup %1978 }
 0x63f   :  { %v772_v44 = vmul.f32 %v1979_v43, %v1977_v41  ;;  %v1981_v48 = vpop.eup %1980  ;;  %v771_v51 = vmul.f32 %v1979_v43, %v677_v20 }
 0x640   :  { %v768_v50 = vadd.f32 1.0, %v1981_v48 }
 0x641   :  { %774 = vrot.lane.b32.xlu0 %v772_v44, %s2048_s5 }
 0x642   :  { %1982 = vrcp.f32 %v768_v50 }
 0x64c   :  { %v1983_v14 = vpop.eup %1982 }
 0x6b3   :  { %v775_v12 = vpop.permute.xlu0 %774 }
 0x6b4   :  { %v777_v53 = vadd.f32 %v775_v12, %v771_v51 }
 0x6b6   :  { %1984 = vtanh.f32 %v777_v53 }
 0x6c0   :  { %v1985_v54 = vpop.eup %1984 }
 0x6c1   :  { %v779_v56 = vmul.f32 %v1985_v54, %v1983_v14 }
 0x6c3   :  { %781 = vrot.lane.b32.xlu1 %v779_v56, %s2048_s5 }
 0x735   :  { %v782_v57 = vpop.permute.xlu1 %781 }
 0x736   :  { %1593 = vmatmul.mubr.msk.f32.vlgmr.msra.gmra.mrb[4].mxu1 %vm328_vm5, %v782_v57 }
 0x737   :  { %1819 = vmatpush1.bf16.msra.mxu1 %v2285_v36  ;;  %949 = vmatprep.mubr.f32.mxu1 %v2047_v11 }
 0x738   :  { %1821 = vmatprep.subr.bf16.mxu1 %v2296_v39 }
 0x73b   :  { %1823 = vmatpush1.bf16.msra.mxu1 %v2304_v42 }
 0x73c   :  { %1825 = vmatprep.subr.bf16.mxu1 %v2314_v45 }
 0x73f   :  { %1827 = vmatpush1.bf16.msra.mxu1 %v2322_v49 }
 0x740   :  { %1829 = vmatprep.subr.bf16.mxu1 %v2332_v52 }
 0x743   :  { %1831 = vmatpush1.bf16.msra.mxu1 %v2340_v55 }
 0x744   :  { %1833 = vmatprep.subr.bf16.mxu1 %v2280_v34 }
 0x809   :  { %v851_v58 = vpop.f32.mrb[4].mxu1 }
 0x80a   :  { %v856_v59 = vadd.f32 %v851_v58, %v2381_v15  ;;  %v853_v60 = vpop.f32.mrb[5].mxu1 }
 0x80b   :  { %v857_v61 = vadd.f32 %v853_v60, %v2383_v17 }
 0x80c   :  { %v1594_v62 = vmul.f32 -1.442695, %v856_v59 }
 0x80d   :  { %v1595_v4 = vmul.f32 -1.442695, %v857_v61 }
 0x80e   :  { %1986 = vpow2.f32 %v1594_v62 }
 0x80f   :  { %1988 = vtanh.f32 %v857_v61 }
 0x818   :  { %v1987_v63 = vpop.eup %1986 }
 0x819   :  { %v861_v0 = vadd.f32 1.0, %v1987_v63  ;;  %v1989_v1 = vpop.eup %1988 }
 0x81b   :  { %1990 = vrcp.f32 %v861_v0 }
 0x81c   :  { %1992 = vpow2.f32 %v1595_v4 }
 0x825   :  { %v1991_v2 = vpop.eup %1990 }
 0x826   :  { %v872_v3 = vmul.f32 %v1991_v2, %v1989_v1  ;;  %v1993_v5 = vpop.eup %1992  ;;  %v871_v8 = vmul.f32 %v1991_v2, %v777_v53 }
 0x827   :  { %v868_v6 = vadd.f32 1.0, %v1993_v5 }
 0x828   :  { %874 = vrot.lane.b32.xlu0 %v872_v3, %s2048_s5 }
 0x829   :  { %1994 = vrcp.f32 %v868_v6 }
 0x833   :  { %v1995_v17 = vpop.eup %1994 }
 0x89a   :  { %v875_v15 = vpop.permute.xlu0 %874 }
 0x89b   :  { %v877_v10 = vadd.f32 %v875_v15, %v871_v8 }
 0x89d   :  { %1996 = vtanh.f32 %v877_v10 }
 0x8a7   :  { %v1997_v13 = vpop.eup %1996 }
 0x8a8   :  { %v879_v46 = vmul.f32 %v1997_v13, %v1995_v17 }
 0x8aa   :  { %881 = vrot.lane.b32.xlu1 %v879_v46, %s2048_s5 }
 0x91c   :  { %v882_v16 = vpop.permute.xlu1 %881 }
 0x91d   :  { %1596 = vmatmul.mubr.msk.f32.vlgmr.msra.gmra.mrb[6].mxu1 %vm328_vm5, %v882_v16 }
 0x91e   :  { %1835 = vmatpush1.bf16.msra.mxu1 %v2285_v36  ;;  %1049 = vmatprep.mubr.f32.mxu1 %v2047_v11 }
 0x91f   :  { %1837 = vmatprep.subr.bf16.mxu1 %v2296_v39 }
 0x922   :  { %1839 = vmatpush1.bf16.msra.mxu1 %v2304_v42 }
 0x923   :  { %1841 = vmatprep.subr.bf16.mxu1 %v2314_v45 }
 0x926   :  { %1843 = vmatpush1.bf16.msra.mxu1 %v2322_v49 }
 0x927   :  { %1845 = vmatprep.subr.bf16.mxu1 %v2332_v52 }
 0x92a   :  { %1847 = vmatpush1.bf16.msra.mxu1 %v2340_v55 }
 0x92b   :  { %1849 = vmatprep.subr.bf16.mxu1 %v2280_v34 }
 0x9f0   :  { %v951_v18 = vpop.f32.mrb[6].mxu1 }
 0x9f1   :  { %v956_v7 = vadd.f32 %v951_v18, %v2385_v19  ;;  %v953_v20 = vpop.f32.mrb[7].mxu1 }
 0x9f2   :  { %v957_v9 = vadd.f32 %v953_v20, %v2387_v21 }
 0x9f3   :  { %v1597_v22 = vmul.f32 -1.442695, %v956_v7 }
 0x9f4   :  { %v1598_v35 = vmul.f32 -1.442695, %v957_v9 }
 0x9f5   :  { %1998 = vpow2.f32 %v1597_v22 }
 0x9f6   :  { %2000 = vtanh.f32 %v957_v9 }
 0x9ff   :  { %v1999_v24 = vpop.eup %1998 }
 0xa00   :  { %v961_v26 = vadd.f32 1.0, %v1999_v24  ;;  %v2001_v28 = vpop.eup %2000 }
 0xa02   :  { %2002 = vrcp.f32 %v961_v26 }
 0xa03   :  { %2004 = vpow2.f32 %v1598_v35  ;;  %v1282_v35 = vld [vmem:[%s2589_s6 + $0x10] sm:$0xff] }
 0xa0c   :  { %v2003_v30 = vpop.eup %2002 }
 0xa0d   :  { %v972_v32 = vmul.f32 %v2003_v30, %v2001_v28  ;;  %v2005_v37 = vpop.eup %2004  ;;  %v971_v40 = vmul.f32 %v2003_v30, %v877_v10 }
 0xa0e   :  { %v968_v38 = vadd.f32 1.0, %v2005_v37 }
 0xa0f   :  { %974 = vrot.lane.b32.xlu0 %v972_v32, %s2048_s5  ;;  %v2049_v32 = vmov 0.0|0.0  }
 0xa10   :  { %2006 = vrcp.f32 %v968_v38  ;;  %1880 = vmatprep.subr.bf16.mxu0 %v2049_v32  ;;  %v1283_v38 = vld [vmem:[%s2589_s6 + $0x18] sm:$0xff] }
 0xa1a   :  { %v2007_v21 = vpop.eup %2006 }
 0xa81   :  { %v975_v19 = vpop.permute.xlu0 %974 }
 0xa82   :  { %v977_v41 = vadd.f32 %v975_v19, %v971_v40  ;;  %v1884_v40 = vpack.c.bf16 %v1283_v38, %v1282_v35  ;;  %v1284_v19 = vld [vmem:[%s2589_s6 + $0x20] sm:$0xff] }
 0xa84   :  { %2008 = vtanh.f32 %v977_v41 }
 0xa8e   :  { %v2009_v43 = vpop.eup %2008 }
 0xa8f   :  { %v979_v44 = vmul.f32 %v2009_v43, %v2007_v21  ;;  %v1286_v43 = vld [vmem:[%s2589_s6 + $0x30] sm:$0xff] }
 0xa91   :  { %981 = vrot.lane.b32.xlu1 %v979_v44, %s2048_s5  ;;  %v1287_v44 = vld [vmem:[%s2589_s6 + $0x38] sm:$0xff] }
 0xb03   :  { %v982_v47 = vpop.permute.xlu1 %981 }
 0xb04   :  { %1599 = vmatmul.mubr.msk.f32.vlgmr.msra.gmra.mrb[8].mxu1 %vm328_vm5, %v982_v47  ;;  %v1890_v47 = vpack.c.bf16 %v1287_v44, %v1286_v43 }
 0xb05   :  { %1851 = vmatpush1.bf16.msra.mxu1 %v2285_v36  ;;  %1149 = vmatprep.mubr.f32.mxu1 %v2047_v11 }
 0xb06   :  { %1853 = vmatprep.subr.bf16.mxu1 %v2296_v39 }
 0xb09   :  { %1855 = vmatpush1.bf16.msra.mxu1 %v2304_v42 }
 0xb0a   :  { %1857 = vmatprep.subr.bf16.mxu1 %v2314_v45 }
 0xb0d   :  { %1859 = vmatpush1.bf16.msra.mxu1 %v2322_v49 }
 0xb0e   :  { %1861 = vmatprep.subr.bf16.mxu1 %v2332_v52 }
 0xb11   :  { %1863 = vmatpush1.bf16.msra.mxu1 %v2340_v55 }
 0xb12   :  { %1865 = vmatprep.subr.bf16.mxu1 %v2280_v34 }
 0xbd7   :  { %v1051_v48 = vpop.f32.mrb[8].mxu1 }
 0xbd8   :  { %v1056_v50 = vadd.f32 %v1051_v48, %v2389_v23  ;;  %v1053_v51 = vpop.f32.mrb[9].mxu1 }
 0xbd9   :  { %v1057_v12 = vadd.f32 %v1053_v51, %v2391_v25 }
 0xbda   :  { %v1600_v53 = vmul.f32 -1.442695, %v1056_v50 }
 0xbdb   :  { %v1601_v59 = vmul.f32 -1.442695, %v1057_v12 }
 0xbdc   :  { %2010 = vpow2.f32 %v1600_v53 }
 0xbdd   :  { %2012 = vtanh.f32 %v1057_v12 }
 0xbe6   :  { %v2011_v14 = vpop.eup %2010 }
 0xbe7   :  { %v1061_v54 = vadd.f32 1.0, %v2011_v14  ;;  %v2013_v56 = vpop.eup %2012 }
 0xbe9   :  { %2014 = vrcp.f32 %v1061_v54 }
 0xbea   :  { %2016 = vpow2.f32 %v1601_v59  ;;  %v1371_v59 = vld [vmem:[%s2590_s8 + $0x8] sm:$0xff] }
 0xbf3   :  { %v2015_v57 = vpop.eup %2014 }
 0xbf4   :  { %v1072_v58 = vmul.f32 %v2015_v57, %v2013_v56  ;;  %v2017_v34 = vpop.eup %2016  ;;  %v1071_v61 = vmul.f32 %v2015_v57, %v977_v41  ;;  %v1285_v41 = vld [vmem:[%s2589_s6 + $0x28] sm:$0xff] }
 0xbf5   :  { %v1068_v60 = vadd.f32 1.0, %v2017_v34  ;;  %v1887_v21 = vpack.c.bf16 %v1285_v41, %v1284_v19 }
 0xbf6   :  { %1074 = vrot.lane.b32.xlu0 %v1072_v58, %s2048_s5  ;;  %v1370_v58 = vld [vmem:[%s2590_s8] sm:$0xff] }
 0xbf7   :  { %2018 = vrcp.f32 %v1068_v60  ;;  %v1893_v34 = vpack.c.bf16 %v1371_v59, %v1370_v58  ;;  %v1372_v60 = vld [vmem:[%s2590_s8 + $0x10] sm:$0xff] }
 0xc01   :  { %v2019_v25 = vpop.eup %2018 }
 0xc68   :  { %v1075_v23 = vpop.permute.xlu0 %1074 }
 0xc69   :  { %v1077_v62 = vadd.f32 %v1075_v23, %v1071_v61  ;;  %v1373_v61 = vld [vmem:[%s2590_s8 + $0x18] sm:$0xff] }
 0xc6b   :  { %2020 = vtanh.f32 %v1077_v62 }
 0xc75   :  { %v2021_v63 = vpop.eup %2020 }
 0xc76   :  { %v1079_v0 = vmul.f32 %v2021_v63, %v2019_v25  ;;  %v1374_v25 = vld [vmem:[%s2590_s8 + $0x20] sm:$0xff]  ;;  %v1375_v63 = vld [vmem:[%s2590_s8 + $0x28] sm:$0xff] }
 0xc78   :  { %1081 = vrot.lane.b32.xlu1 %v1079_v0, %s2048_s5  ;;  %v1899_v0 = vpack.c.bf16 %v1375_v63, %v1374_v25 }
 0xcea   :  { %v1082_v1 = vpop.permute.xlu1 %1081 }
 0xceb   :  { %1602 = vmatmul.mubr.msk.f32.vlgmr.msra.gmra.mrb[10].mxu1 %vm328_vm5, %v1082_v1  ;;  %v1376_v1 = vld [vmem:[%s2590_s8 + $0x30] sm:$0xff] }
 0xcec   :  { %1867 = vmatpush1.bf16.msra.mxu1 %v2285_v36  ;;  %1249 = vmatprep.mubr.f32.mxu1 %v2047_v11 }
 0xced   :  { %1869 = vmatprep.subr.bf16.mxu1 %v2296_v39 }
 0xcf0   :  { %1871 = vmatpush1.bf16.msra.mxu1 %v2304_v42 }
 0xcf1   :  { %1873 = vmatprep.subr.bf16.mxu1 %v2314_v45 }
 0xcf4   :  { %1875 = vmatpush1.bf16.msra.mxu1 %v2322_v49 }
 0xcf5   :  { %1877 = vmatprep.subr.bf16.mxu1 %v2332_v52 }
 0xcf8   :  { %1879 = vmatpush1.bf16.msra.mxu1 %v2340_v55 }
 0xdbe   :  { %v1151_v2 = vpop.f32.mrb[10].mxu1 }
 0xdbf   :  { %v1156_v3 = vadd.f32 %v1151_v2, %v2393_v27  ;;  %v1153_v4 = vpop.f32.mrb[11].mxu1  ;;  %v1377_v2 = vld [vmem:[%s2590_s8 + $0x38] sm:$0xff] }
 0xdc0   :  { %v1157_v36 = vadd.f32 %v1153_v4, %v2395_v29  ;;  %v1456_v4 = vld [vmem:[%s2591_s10] sm:$0xff] }
 0xdc1   :  { %v1603_v5 = vmul.f32 -1.442695, %v1156_v3  ;;  %v1902_v3 = vpack.c.bf16 %v1377_v2, %v1376_v1 }
 0xdc2   :  { %v1604_v49 = vmul.f32 -1.442695, %v1157_v36 }
 0xdc3   :  { %2022 = vpow2.f32 %v1603_v5 }
 0xdc4   :  { %2024 = vtanh.f32 %v1157_v36  ;;  %v1457_v36 = vld [vmem:[%s2591_s10 + $0x8] sm:$0xff] }
 0xdc5   :  { %v1905_v5 = vpack.c.bf16 %v1457_v36, %v1456_v4 }
 0xdcd   :  { %v2023_v6 = vpop.eup %2022 }
 0xdce   :  { %v1161_v39 = vadd.f32 1.0, %v2023_v6  ;;  %v2025_v42 = vpop.eup %2024  ;;  %v1458_v6 = vld [vmem:[%s2591_s10 + $0x10] sm:$0xff] }
 0xdd0   :  { %2026 = vrcp.f32 %v1161_v39 }
 0xdd1   :  { %2028 = vpow2.f32 %v1604_v49 }
 0xdda   :  { %v2027_v45 = vpop.eup %2026 }
 0xddb   :  { %v1172_v8 = vmul.f32 %v2027_v45, %v2025_v42  ;;  %v2029_v52 = vpop.eup %2028  ;;  %v1171_v15 = vmul.f32 %v2027_v45, %v1077_v62  ;;  %v1896_v62 = vpack.c.bf16 %v1373_v61, %v1372_v60  ;;  %v1608_v42 = vld [vmem:[%s2592_s7] ss:$0 sm:$0xff]  ;;  %s2051_s7 = smov 80  }
 0xddc   :  { %v1168_v55 = vadd.f32 1.0, %v2029_v52  ;;  %v1610_v52 = vld [vmem:[%s2593_s9] ss:$0 sm:$0xff] }
 0xddd   :  { %1174 = vrot.lane.b32.xlu0 %v1172_v8, %s2048_s5 }
 0xdde   :  { %2030 = vrcp.f32 %v1168_v55 }
 0xde8   :  { %v2031_v29 = vpop.eup %2030 }
 0xe4f   :  { %v1175_v27 = vpop.permute.xlu0 %1174 }
 0xe50   :  { %v1177_v10 = vadd.f32 %v1175_v27, %v1171_v15 }
 0xe52   :  { %2032 = vtanh.f32 %v1177_v10 }
 0xe5c   :  { %v2033_v17 = vpop.eup %2032 }
 0xe5d   :  { %v1179_v13 = vmul.f32 %v2033_v17, %v2031_v29  ;;  %v1612_v29 = vld [vmem:[%s2594_s11] ss:$0 sm:$0xff] }
 0xe5f   :  { %1181 = vrot.lane.b32.xlu1 %v1179_v13, %s2048_s5 }
 0xed1   :  { %v1182_v46 = vpop.permute.xlu1 %1181 }
 0xed2   :  { %1605 = vmatmul.mubr.msk.f32.vlgmr.msra.gmra.mrb[12].mxu1 %vm328_vm5, %v1182_v46 }
 0xfa5   :  { %v1251_v16 = vpop.f32.mrb[12].mxu1 }
 0xfa6   :  { %v1256_v18 = vadd.f32 %v1251_v16, %v2397_v31  ;;  %v1253_v7 = vpop.f32.mrb[13].mxu1  ;;  %v1280_v31 = vld [vmem:[%s2589_s6] sm:$0xff] }
 0xfa7   :  { %v1257_v20 = vadd.f32 %v1253_v7, %v2399_v33  ;;  %v1281_v33 = vld [vmem:[%s2589_s6 + $0x8] sm:$0xff] }
 0xfa8   :  { %v1606_v9 = vmul.f32 -1.442695, %v1256_v18  ;;  %v1881_v37 = vpack.c.bf16 %v1281_v33, %v1280_v31 }
 0xfa9   :  { %v1607_v48 = vmul.f32 -1.442695, %v1257_v20 }
 0xfaa   :  { %2034 = vpow2.f32 %v1606_v9  ;;  %1882 = vmatpush3.bf16.msra.mxu0 %v1881_v37 }
 0xfab   :  { %2036 = vtanh.f32 %v1257_v20  ;;  %1883 = vmatprep.subr.bf16.mxu0 %v2049_v32 }
 0xfae   :  { %1885 = vmatpush3.bf16.msra.mxu0 %v1884_v40 }
 0xfaf   :  { %1886 = vmatprep.subr.bf16.mxu0 %v2049_v32 }
 0xfb2   :  { %1888 = vmatpush3.bf16.msra.mxu0 %v1887_v21 }
 0xfb3   :  { %1889 = vmatprep.subr.bf16.mxu0 %v2049_v32 }
 0xfb4   :  { %v2035_v22 = vpop.eup %2034 }
 0xfb5   :  { %v1261_v24 = vadd.f32 1.0, %v2035_v22  ;;  %v2037_v26 = vpop.eup %2036 }
 0xfb6   :  { %1891 = vmatpush3.bf16.msra.mxu0 %v1890_v47 }
 0xfb7   :  { %2038 = vrcp.f32 %v1261_v24  ;;  %1892 = vmatprep.subr.bf16.mxu0 %v2049_v32 }
 0xfb8   :  { %2040 = vpow2.f32 %v1607_v48 }
 0xfc1   :  { %v2039_v28 = vpop.eup %2038 }
 0xfc2   :  { %v1272_v30 = vmul.f32 %v2039_v28, %v2037_v26  ;;  %v2041_v50 = vpop.eup %2040  ;;  %v1271_v12 = vmul.f32 %v2039_v28, %v1177_v10 }
 0xfc3   :  { %v1268_v51 = vadd.f32 1.0, %v2041_v50 }
 0xfc4   :  { %1274 = vrot.lane.b32.xlu0 %v1272_v30, %s2048_s5 }
 0xfc5   :  { %2042 = vrcp.f32 %v1268_v51 }
 0xfcf   :  { %v2043_v54 = vpop.eup %2042 }
0x1036   :  { %v1275_v53 = vpop.permute.xlu0 %1274 }
0x1037   :  { %v1277_v14 = vadd.f32 %v1275_v53, %v1271_v12 }
0x1039   :  { %2044 = vtanh.f32 %v1277_v14 }
0x1043   :  { %v2045_v56 = vpop.eup %2044 }
0x1044   :  { %v1279_v57 = vmul.f32 %v2045_v56, %v2043_v54 }
0x1046   :  { %1296 = vrot.lane.b32.xlu1 %v1279_v57, %s2048_s5 }
0x10b8   :  { %v1297_v23 = vpop.permute.xlu1 %1296 }
0x10b9   :  { %1692 = vmatmul.mubr.msk.f32.vlgmr.msra.gmra.mrb[24].mxu0 %vm328_vm5, %v1297_v23 }
0x10ba   :  { %1894 = vmatpush3.bf16.msra.mxu0 %v1893_v34  ;;  %1710 = vmatprep.mubr.msk.f32.mxu0 %vm2050_vm10, %v2047_v11 }
0x10bb   :  { %1895 = vmatprep.subr.bf16.mxu0 %v2049_v32 }
0x10be   :  { %1897 = vmatpush3.bf16.msra.mxu0 %v1896_v62 }
0x10bf   :  { %1898 = vmatprep.subr.bf16.mxu0 %v2049_v32 }
0x10c2   :  { %1900 = vmatpush3.bf16.msra.mxu0 %v1899_v0 }
0x10c3   :  { %1901 = vmatprep.subr.bf16.mxu0 %v2049_v32 }
0x10c6   :  { %1903 = vmatpush3.bf16.msra.mxu0 %v1902_v3 }
0x10c7   :  { %1904 = vmatprep.subr.bf16.mxu0 %v2049_v32 }
0x10c9   :  { %1711 = vmatmul.mubr.msk.f32.vlgmr.msra.gmra.mrb[26].mxu0 %vm328_vm5, %v1297_v23 }
0x10ca   :  { %1721 = vmatprep.mubr.msk.f32.mxu0 %vm2050_vm10, %v2047_v11  ;;  %1906 = vmatpush3.bf16.msra.mxu0 %v1905_v5  ;;  %v1459_v11 = vld [vmem:[%s2591_s10 + $0x18] sm:$0xff] }
0x10cb   :  { %1907 = vmatprep.subr.bf16.mxu0 %v2049_v32  ;;  %v1908_v39 = vpack.c.bf16 %v1459_v11, %v1458_v6 }
0x10ce   :  { %1909 = vmatpush3.bf16.msra.mxu0 %v1908_v39 }
0x118c   :  { %v1366_v45 = vpop.f32.mrb[24].mxu0 }
0x118d   :  { %v1367_v8 = vadd.f32 %v1608_v42, %v1366_v45  ;;  %v1693_v49 = vpop.f32.mrb[25].mxu0 }
0x118f   :  { %1543 = vrot.lane.b32.xlu0 %v1367_v8, %s2048_s5 }
0x119c   :  { %v1451_v55 = vpop.f32.mrb[26].mxu0 }
0x119d   :  { %v1452_v15 = vadd.f32 %v1610_v52, %v1451_v55  ;;  %v1712_v27 = vpop.f32.mrb[27].mxu0 }
0x119f   :  { %v1455_v10 = vmax.f32 %v1452_v15, 0.0 }
0x11a1   :  { %1722 = vmatmul.mubr.msk.f32.vlgmr.msra.gmra.mrb[28].mxu0 %vm1467_vm11, %v1455_v10 }
0x1201   :  { %v1544_v16 = vpop.permute.xlu0 %1543 }
0x1202   :  { %v1550_v18 = vsel %vm328_vm5, %v1297_v23, %v1544_v16 }
0x1274   :  { %v1537_v17 = vpop.f32.mrb[28].mxu0 }
0x1275   :  { %v1538_v13 = vadd.f32 %v1612_v29, %v1537_v17  ;;  %v1723_v46 = vpop.f32.mrb[29].mxu0 }
0x1277   :  { %1547 = vrot.lane.b32.xlu1 %v1538_v13, %s2051_s7 }
0x12e9   :  { %v1548_v7 = vpop.permute.xlu1 %1547 }
0x12ea   :  { %v1552_v20 = vsel %vm1551_vm12, %v1550_v18, %v1548_v7 }
0x12eb   :  { %v1554_v9 = vsel %vm1553_vm13, %v1552_v20, 0.0 }
0x12ec   :  { %1555 = vst [vmem:[%s2595_s12] sm:$0xff] %v1554_v9 }

</bundles_post_ra>
